<compile_context>
chip_gen: v7x
topology: tpu7x:2x2x1
jax: 0.10.0
libtpu: 0.0.40
codegen_flags: <defaults>
</compile_context>

<pallas_src>
import functools

import numpy as np
import jax
import jax.numpy as jnp
from jax.experimental import pallas as pl
from jax.experimental.pallas import tpu as pltpu


def _round_up(x, m):
    return ((x + m - 1) // m) * m


# ----------------------------------------------------------------------------
# Pallas kernel: full MAF forward (x = f(z)) sequential loop.
# ----------------------------------------------------------------------------
def maf_forward_kernel(z_ref, w1_ref, b1_ref, gamma_ref, beta_ref,
                       w2mu_ref, w2a_ref, b2mu_ref, b2a_ref, rmask_ref,
                       x_out_ref, logdet_ref, *, d_real, inv_b):
    B, Dp = z_ref.shape
    Hp = w1_ref.shape[1]
    eps = 1e-5

    # ---- hoisted loop invariants (loaded / broadcast once) -----------------
    z = z_ref[...]
    w2mu = w2mu_ref[...]                        # (Hp, Dp)
    w2a = w2a_ref[...]                          # (Hp, Dp)
    b1 = b1_ref[...]                            # (1, Hp)
    gamma = gamma_ref[...]                      # (1, Hp)
    beta = beta_ref[...]                        # (1, Hp)
    b2mu = b2mu_ref[...]                        # (1, Dp)
    b2a = b2a_ref[...]                          # (1, Dp)
    rmask = rmask_ref[...]                      # (B, 1): 1.0 real row, 0.0 pad

    col_ids = jax.lax.broadcasted_iota(jnp.int32, (B, Dp), 1)

    x0 = jnp.zeros((B, Dp), jnp.float32)
    ld0 = jnp.zeros((B, 1), jnp.float32)
    h0 = jnp.broadcast_to(b1, (B, Hp))          # x == 0  ->  x @ w1 + b1 == b1

    def body(i, carry):
        x, ld, h_pre = carry

        # ---- BatchNorm1d (training mode, batch stats over real rows only),
        #      affine folded into one scale/shift, then ReLU -----------------
        mean = jnp.sum(h_pre * rmask, axis=0, keepdims=True) * inv_b
        diff = h_pre - mean
        var = jnp.sum(diff * diff * rmask, axis=0, keepdims=True) * inv_b
        scale = gamma * jax.lax.rsqrt(var + eps)
        shift = beta - mean * scale
        h = jnp.maximum(h_pre * scale + shift, 0.0)

        # ---- second MaskedLinear, split into lane-dense mu / alpha heads ---
        mu = jnp.dot(h, w2mu, preferred_element_type=jnp.float32) + b2mu
        alpha = jnp.dot(h, w2a, preferred_element_type=jnp.float32) + b2a

        # ---- extract column i only; clip / exp on a (B,1) tile -------------
        sel = col_ids == i
        sel_f = sel.astype(jnp.float32)
        mu_i = jnp.sum(mu * sel_f, axis=1, keepdims=True)
        a_i = jnp.clip(jnp.sum(alpha * sel_f, axis=1, keepdims=True),
                       -10.0, 10.0)
        z_i = jnp.sum(z * sel_f, axis=1, keepdims=True)

        new_col = z_i * jnp.exp(a_i) + mu_i                 # (B, 1)
        x = jnp.where(sel, new_col, x)
        ld = ld + a_i

        # ---- rank-1 incremental update of the first-layer pre-activation ---
        # (w1 is pre-masked, so row i already encodes the autoregressive mask)
        w1_row = w1_ref[pl.ds(i, 1), :]                     # (1, Hp)
        h_pre = h_pre + new_col * w1_row
        return x, ld, h_pre

    x, ld, _ = jax.lax.fori_loop(0, d_real, body, (x0, ld0, h0), unroll=True)

    x_out_ref[...] = x
    logdet_ref[...] = ld


# ----------------------------------------------------------------------------
# Wrapper: pad to TPU-friendly shapes and launch a single pallas_call.
# ----------------------------------------------------------------------------
def maf_forward(z, p):
    B, D = z.shape
    H = p["w1"].shape[1]

    Bp = _round_up(B, 8)        # f32 sublanes
    Dp = _round_up(D, 128)      # lanes
    Hp = _round_up(H, 128)      # lanes

    f32 = jnp.float32
    zp = jnp.zeros((Bp, Dp), f32).at[:B, :D].set(z.astype(f32))
    w1p = jnp.zeros((Dp, Hp), f32).at[:D, :H].set(p["w1"])
    b1p = jnp.zeros((1, Hp), f32).at[:, :H].set(p["b1"])
    gammap = jnp.zeros((1, Hp), f32).at[:, :H].set(p["gamma"])
    betap = jnp.zeros((1, Hp), f32).at[:, :H].set(p["beta"])
    w2 = p["w2"]                                            # (H, 2D)
    w2mu = jnp.zeros((Hp, Dp), f32).at[:H, :D].set(w2[:, :D])
    w2a = jnp.zeros((Hp, Dp), f32).at[:H, :D].set(w2[:, D:])
    b2mu = jnp.zeros((1, Dp), f32).at[:, :D].set(p["b2"][:, :D])
    b2a = jnp.zeros((1, Dp), f32).at[:, :D].set(p["b2"][:, D:])
    rmask = jnp.zeros((Bp, 1), f32).at[:B, :].set(1.0)

    kernel = functools.partial(maf_forward_kernel, d_real=D, inv_b=1.0 / B)

    x_pad, ld_pad = pl.pallas_call(
        kernel,
        out_shape=(
            jax.ShapeDtypeStruct((Bp, Dp), jnp.float32),
            jax.ShapeDtypeStruct((Bp, 1), jnp.float32),
        ),
        in_specs=[pl.BlockSpec(memory_space=pltpu.MemorySpace.VMEM)] * 10,
        out_specs=(
            pl.BlockSpec(memory_space=pltpu.MemorySpace.VMEM),
            pl.BlockSpec(memory_space=pltpu.MemorySpace.VMEM),
        ),
    )(zp, w1p, b1p, gammap, betap, w2mu, w2a, b2mu, b2a, rmask)

    return x_pad[:B, :D], ld_pad[:B, 0]


# ----------------------------------------------------------------------------
# Deterministic parameter construction (mirrors MADE.__init__ / create_masks)
# ----------------------------------------------------------------------------
def make_params(dim, hidden_dim, key):
    D, H = dim, hidden_dim
    rng = np.random.RandomState(0)

    m_in = np.arange(D)
    m0 = rng.randint(0, D - 1, size=H)
    m1 = np.arange(D)

    mask1 = (m_in[:, None] <= m0[None, :]).T.astype(np.float32)        # (H, D)
    base = (m0[:, None] < m1[None, :]).T.astype(np.float32)            # (D, H)
    mask2 = np.repeat(base, 2, axis=0)                                  # (2D, H)

    k1, k2 = jax.random.split(key)
    # xavier_uniform_ init for the MaskedLinear weights
    bound1 = float(np.sqrt(6.0 / (D + H)))
    bound2 = float(np.sqrt(6.0 / (H + 2 * D)))
    W1 = jax.random.uniform(k1, (H, D), jnp.float32, -bound1, bound1)   # (out, in)
    W2 = jax.random.uniform(k2, (2 * D, H), jnp.float32, -bound2, bound2)

    # Pre-apply masks and transpose to (in, out) for the kernel matmuls.
    w1_eff = (jnp.asarray(mask1) * W1).T       # (D, H)
    w2_eff = (jnp.asarray(mask2) * W2).T       # (H, 2D)

    return {
        "w1": w1_eff,
        "b1": jnp.zeros((1, H), jnp.float32),
        "gamma": jnp.ones((1, H), jnp.float32),
        "beta": jnp.zeros((1, H), jnp.float32),
        "w2": w2_eff,
        "b2": jnp.zeros((1, 2 * D), jnp.float32),
    }


# ----------------------------------------------------------------------------
# Pure-JAX reference (same math, no Pallas) for a sanity check.
# ----------------------------------------------------------------------------
def maf_forward_ref(z, p):
    B, D = z.shape
    eps = 1e-5
    x = jnp.zeros_like(z)
    logdet = jnp.zeros((B,), jnp.float32)
    for i in range(D):
        h = x @ p["w1"] + p["b1"]
        mean = jnp.mean(h, axis=0, keepdims=True)
        var = jnp.mean((h - mean) ** 2, axis=0, keepdims=True)
        h = (h - mean) / jnp.sqrt(var + eps) * p["gamma"] + p["beta"]
        h = jnp.maximum(h, 0.0)
        params = h @ p["w2"] + p["b2"]
        mu, alpha = params[:, :D], jnp.clip(params[:, D:], -10.0, 10.0)
        x = x.at[:, i].set(z[:, i] * jnp.exp(alpha[:, i]) + mu[:, i])
        logdet = logdet + alpha[:, i]
    return x, logdet


if __name__ == "__main__":
    B, D, H = 4, 8, 32
    key = jax.random.PRNGKey(0)
    kz, kp = jax.random.split(key)

    z = jax.random.normal(kz, (B, D), jnp.float32)
    params = make_params(D, H, kp)

    x, logdet = maf_forward(z, params)
    jax.block_until_ready((x, logdet))

    x_ref, ld_ref = maf_forward_ref(z, params)
    np.testing.assert_allclose(np.asarray(x), np.asarray(x_ref), rtol=1e-3, atol=1e-3)
    np.testing.assert_allclose(np.asarray(logdet), np.asarray(ld_ref), rtol=1e-3, atol=1e-3)

    print("KERNEL_OK")
</pallas_src>

<mosaic_0001>
module attributes {stable_mosaic.version = 11 : i64} {
  func.func @maf_forward_kernel(%arg0: memref<8x128xf32, #tpu.memory_space<vmem>>, %arg1: memref<128x128xf32, #tpu.memory_space<vmem>>, %arg2: memref<1x128xf32, #tpu.memory_space<vmem>>, %arg3: memref<1x128xf32, #tpu.memory_space<vmem>>, %arg4: memref<1x128xf32, #tpu.memory_space<vmem>>, %arg5: memref<128x128xf32, #tpu.memory_space<vmem>>, %arg6: memref<128x128xf32, #tpu.memory_space<vmem>>, %arg7: memref<1x128xf32, #tpu.memory_space<vmem>>, %arg8: memref<1x128xf32, #tpu.memory_space<vmem>>, %arg9: memref<8x1xf32, #tpu.memory_space<vmem>>, %arg10: memref<8x128xf32, #tpu.memory_space<vmem>>, %arg11: memref<8x1xf32, #tpu.memory_space<vmem>>) attributes {dimension_semantics = [], scalar_prefetch = 0 : i64, scratch_operands = 0 : i64, tpu.core_type = #tpu.core_type<tc>} {
    %c0 = arith.constant 0 : index
    %c0_0 = arith.constant 0 : index
    %0 = vector.load %arg0[%c0, %c0_0] : memref<8x128xf32, #tpu.memory_space<vmem>>, vector<8x128xf32>
    %c0_1 = arith.constant 0 : index
    %c0_2 = arith.constant 0 : index
    %1 = vector.load %arg5[%c0_1, %c0_2] : memref<128x128xf32, #tpu.memory_space<vmem>>, vector<128x128xf32>
    %c0_3 = arith.constant 0 : index
    %c0_4 = arith.constant 0 : index
    %2 = vector.load %arg6[%c0_3, %c0_4] : memref<128x128xf32, #tpu.memory_space<vmem>>, vector<128x128xf32>
    %c0_5 = arith.constant 0 : index
    %c0_6 = arith.constant 0 : index
    %3 = vector.load %arg2[%c0_5, %c0_6] : memref<1x128xf32, #tpu.memory_space<vmem>>, vector<1x128xf32>
    %c0_7 = arith.constant 0 : index
    %c0_8 = arith.constant 0 : index
    %4 = vector.load %arg3[%c0_7, %c0_8] : memref<1x128xf32, #tpu.memory_space<vmem>>, vector<1x128xf32>
    %c0_9 = arith.constant 0 : index
    %c0_10 = arith.constant 0 : index
    %5 = vector.load %arg4[%c0_9, %c0_10] : memref<1x128xf32, #tpu.memory_space<vmem>>, vector<1x128xf32>
    %c0_11 = arith.constant 0 : index
    %c0_12 = arith.constant 0 : index
    %6 = vector.load %arg7[%c0_11, %c0_12] : memref<1x128xf32, #tpu.memory_space<vmem>>, vector<1x128xf32>
    %c0_13 = arith.constant 0 : index
    %c0_14 = arith.constant 0 : index
    %7 = vector.load %arg8[%c0_13, %c0_14] : memref<1x128xf32, #tpu.memory_space<vmem>>, vector<1x128xf32>
    %c0_15 = arith.constant 0 : index
    %c0_16 = arith.constant 0 : index
    %8 = vector.load %arg9[%c0_15, %c0_16] : memref<8x1xf32, #tpu.memory_space<vmem>>, vector<8x1xf32>
    %9 = tpu.iota {dimensions = array<i32: 1>} : vector<8x128xi32>
    %cst = arith.constant 0.000000e+00 : f32
    %10 = vector.broadcast %cst : f32 to vector<8x128xf32>
    %cst_17 = arith.constant 0.000000e+00 : f32
    %11 = vector.broadcast %cst_17 : f32 to vector<8x1xf32>
    %12 = vector.shape_cast %3 : vector<1x128xf32> to vector<1x128xf32>
    %13 = vector.broadcast %12 : vector<1x128xf32> to vector<8x128xf32>
    %c0_i32 = arith.constant 0 : i32
    %14 = vector.broadcast %8 : vector<8x1xf32> to vector<8x128xf32>
    %15 = arith.mulf %13, %14 : vector<8x128xf32>
    %cst_18 = arith.constant dense<0.000000e+00> : vector<128xf32>
    %16 = vector.multi_reduction <add>, %15, %cst_18 [0] : vector<8x128xf32> to vector<128xf32>
    %17 = vector.shape_cast %16 : vector<128xf32> to vector<1x128xf32>
    %cst_19 = arith.constant 2.500000e-01 : f32
    %18 = vector.broadcast %cst_19 : f32 to vector<1x128xf32>
    %19 = arith.mulf %17, %18 : vector<1x128xf32>
    %20 = vector.broadcast %19 : vector<1x128xf32> to vector<8x128xf32>
    %21 = arith.subf %13, %20 : vector<8x128xf32>
    %22 = arith.mulf %21, %21 : vector<8x128xf32>
    %23 = vector.broadcast %8 : vector<8x1xf32> to vector<8x128xf32>
    %24 = arith.mulf %22, %23 : vector<8x128xf32>
    %cst_20 = arith.constant dense<0.000000e+00> : vector<128xf32>
    %25 = vector.multi_reduction <add>, %24, %cst_20 [0] : vector<8x128xf32> to vector<128xf32>
    %26 = vector.shape_cast %25 : vector<128xf32> to vector<1x128xf32>
    %cst_21 = arith.constant 2.500000e-01 : f32
    %27 = vector.broadcast %cst_21 : f32 to vector<1x128xf32>
    %28 = arith.mulf %26, %27 : vector<1x128xf32>
    %cst_22 = arith.constant 9.99999974E-6 : f32
    %29 = vector.broadcast %cst_22 : f32 to vector<1x128xf32>
    %30 = arith.addf %28, %29 : vector<1x128xf32>
    %31 = math.rsqrt %30 : vector<1x128xf32>
    %32 = arith.mulf %4, %31 : vector<1x128xf32>
    %33 = arith.mulf %19, %32 : vector<1x128xf32>
    %34 = arith.subf %5, %33 : vector<1x128xf32>
    %35 = vector.broadcast %32 : vector<1x128xf32> to vector<8x128xf32>
    %36 = arith.mulf %13, %35 : vector<8x128xf32>
    %37 = vector.broadcast %34 : vector<1x128xf32> to vector<8x128xf32>
    %38 = arith.addf %36, %37 : vector<8x128xf32>
    %cst_23 = arith.constant 0.000000e+00 : f32
    %39 = vector.broadcast %cst_23 : f32 to vector<8x128xf32>
    %40 = arith.maximumf %38, %39 : vector<8x128xf32>
    %cst_24 = arith.constant dense<0.000000e+00> : vector<8x128xf32>
    %41 = tpu.matmul %40, %1, %cst_24 {dimension_numbers = #tpu.dot_dimension_numbers<[1], [0], [0], [1], [0, 0, 1, 1], [], []>} : vector<8x128xf32>, vector<128x128xf32>, vector<8x128xf32> -> vector<8x128xf32>
    %42 = vector.broadcast %6 : vector<1x128xf32> to vector<8x128xf32>
    %43 = arith.addf %41, %42 : vector<8x128xf32>
    %cst_25 = arith.constant dense<0.000000e+00> : vector<8x128xf32>
    %44 = tpu.matmul %40, %2, %cst_25 {dimension_numbers = #tpu.dot_dimension_numbers<[1], [0], [0], [1], [0, 0, 1, 1], [], []>} : vector<8x128xf32>, vector<128x128xf32>, vector<8x128xf32> -> vector<8x128xf32>
    %45 = vector.broadcast %7 : vector<1x128xf32> to vector<8x128xf32>
    %46 = arith.addf %44, %45 : vector<8x128xf32>
    %47 = vector.broadcast %c0_i32 : i32 to vector<8x128xi32>
    %48 = arith.cmpi eq, %9, %47 : vector<8x128xi32>
    %49 = arith.extui %48 : vector<8x128xi1> to vector<8x128xi32>
    %50 = arith.sitofp %49 : vector<8x128xi32> to vector<8x128xf32>
    %51 = arith.mulf %43, %50 : vector<8x128xf32>
    %cst_26 = arith.constant dense<0.000000e+00> : vector<8xf32>
    %52 = vector.multi_reduction <add>, %51, %cst_26 [1] : vector<8x128xf32> to vector<8xf32>
    %53 = vector.shape_cast %52 : vector<8xf32> to vector<8x1xf32>
    %54 = arith.mulf %46, %50 : vector<8x128xf32>
    %cst_27 = arith.constant dense<0.000000e+00> : vector<8xf32>
    %55 = vector.multi_reduction <add>, %54, %cst_27 [1] : vector<8x128xf32> to vector<8xf32>
    %56 = vector.shape_cast %55 : vector<8xf32> to vector<8x1xf32>
    %cst_28 = arith.constant -1.000000e+01 : f32
    %cst_29 = arith.constant 1.000000e+01 : f32
    %57 = vector.broadcast %cst_28 : f32 to vector<8x1xf32>
    %58 = arith.maximumf %57, %56 : vector<8x1xf32>
    %59 = vector.broadcast %cst_29 : f32 to vector<8x1xf32>
    %60 = arith.minimumf %59, %58 : vector<8x1xf32>
    %61 = arith.mulf %0, %50 : vector<8x128xf32>
    %cst_30 = arith.constant dense<0.000000e+00> : vector<8xf32>
    %62 = vector.multi_reduction <add>, %61, %cst_30 [1] : vector<8x128xf32> to vector<8xf32>
    %63 = vector.shape_cast %62 : vector<8xf32> to vector<8x1xf32>
    %64 = math.exp %60 : vector<8x1xf32>
    %65 = arith.mulf %63, %64 : vector<8x1xf32>
    %66 = arith.addf %65, %53 : vector<8x1xf32>
    %67 = vector.shape_cast %66 : vector<8x1xf32> to vector<8x1xf32>
    %68 = vector.broadcast %67 : vector<8x1xf32> to vector<8x128xf32>
    %69 = arith.select %48, %68, %10 : vector<8x128xi1>, vector<8x128xf32>
    %70 = arith.addf %11, %60 : vector<8x1xf32>
    %71 = arith.index_cast %c0_i32 : i32 to index
    %c0_31 = arith.constant 0 : index
    %72 = vector.load %arg1[%71, %c0_31] : memref<128x128xf32, #tpu.memory_space<vmem>>, vector<1x128xf32>
    %73 = vector.broadcast %66 : vector<8x1xf32> to vector<8x128xf32>
    %74 = vector.broadcast %72 : vector<1x128xf32> to vector<8x128xf32>
    %75 = arith.mulf %73, %74 : vector<8x128xf32>
    %76 = arith.addf %13, %75 : vector<8x128xf32>
    %c1_i32 = arith.constant 1 : i32
    %77 = vector.broadcast %8 : vector<8x1xf32> to vector<8x128xf32>
    %78 = arith.mulf %76, %77 : vector<8x128xf32>
    %cst_32 = arith.constant dense<0.000000e+00> : vector<128xf32>
    %79 = vector.multi_reduction <add>, %78, %cst_32 [0] : vector<8x128xf32> to vector<128xf32>
    %80 = vector.shape_cast %79 : vector<128xf32> to vector<1x128xf32>
    %cst_33 = arith.constant 2.500000e-01 : f32
    %81 = vector.broadcast %cst_33 : f32 to vector<1x128xf32>
    %82 = arith.mulf %80, %81 : vector<1x128xf32>
    %83 = vector.broadcast %82 : vector<1x128xf32> to vector<8x128xf32>
    %84 = arith.subf %76, %83 : vector<8x128xf32>
    %85 = arith.mulf %84, %84 : vector<8x128xf32>
    %86 = vector.broadcast %8 : vector<8x1xf32> to vector<8x128xf32>
    %87 = arith.mulf %85, %86 : vector<8x128xf32>
    %cst_34 = arith.constant dense<0.000000e+00> : vector<128xf32>
    %88 = vector.multi_reduction <add>, %87, %cst_34 [0] : vector<8x128xf32> to vector<128xf32>
    %89 = vector.shape_cast %88 : vector<128xf32> to vector<1x128xf32>
    %cst_35 = arith.constant 2.500000e-01 : f32
    %90 = vector.broadcast %cst_35 : f32 to vector<1x128xf32>
    %91 = arith.mulf %89, %90 : vector<1x128xf32>
    %cst_36 = arith.constant 9.99999974E-6 : f32
    %92 = vector.broadcast %cst_36 : f32 to vector<1x128xf32>
    %93 = arith.addf %91, %92 : vector<1x128xf32>
    %94 = math.rsqrt %93 : vector<1x128xf32>
    %95 = arith.mulf %4, %94 : vector<1x128xf32>
    %96 = arith.mulf %82, %95 : vector<1x128xf32>
    %97 = arith.subf %5, %96 : vector<1x128xf32>
    %98 = vector.broadcast %95 : vector<1x128xf32> to vector<8x128xf32>
    %99 = arith.mulf %76, %98 : vector<8x128xf32>
    %100 = vector.broadcast %97 : vector<1x128xf32> to vector<8x128xf32>
    %101 = arith.addf %99, %100 : vector<8x128xf32>
    %cst_37 = arith.constant 0.000000e+00 : f32
    %102 = vector.broadcast %cst_37 : f32 to vector<8x128xf32>
    %103 = arith.maximumf %101, %102 : vector<8x128xf32>
    %cst_38 = arith.constant dense<0.000000e+00> : vector<8x128xf32>
    %104 = tpu.matmul %103, %1, %cst_38 {dimension_numbers = #tpu.dot_dimension_numbers<[1], [0], [0], [1], [0, 0, 1, 1], [], []>} : vector<8x128xf32>, vector<128x128xf32>, vector<8x128xf32> -> vector<8x128xf32>
    %105 = vector.broadcast %6 : vector<1x128xf32> to vector<8x128xf32>
    %106 = arith.addf %104, %105 : vector<8x128xf32>
    %cst_39 = arith.constant dense<0.000000e+00> : vector<8x128xf32>
    %107 = tpu.matmul %103, %2, %cst_39 {dimension_numbers = #tpu.dot_dimension_numbers<[1], [0], [0], [1], [0, 0, 1, 1], [], []>} : vector<8x128xf32>, vector<128x128xf32>, vector<8x128xf32> -> vector<8x128xf32>
    %108 = vector.broadcast %7 : vector<1x128xf32> to vector<8x128xf32>
    %109 = arith.addf %107, %108 : vector<8x128xf32>
    %110 = vector.broadcast %c1_i32 : i32 to vector<8x128xi32>
    %111 = arith.cmpi eq, %9, %110 : vector<8x128xi32>
    %112 = arith.extui %111 : vector<8x128xi1> to vector<8x128xi32>
    %113 = arith.sitofp %112 : vector<8x128xi32> to vector<8x128xf32>
    %114 = arith.mulf %106, %113 : vector<8x128xf32>
    %cst_40 = arith.constant dense<0.000000e+00> : vector<8xf32>
    %115 = vector.multi_reduction <add>, %114, %cst_40 [1] : vector<8x128xf32> to vector<8xf32>
    %116 = vector.shape_cast %115 : vector<8xf32> to vector<8x1xf32>
    %117 = arith.mulf %109, %113 : vector<8x128xf32>
    %cst_41 = arith.constant dense<0.000000e+00> : vector<8xf32>
    %118 = vector.multi_reduction <add>, %117, %cst_41 [1] : vector<8x128xf32> to vector<8xf32>
    %119 = vector.shape_cast %118 : vector<8xf32> to vector<8x1xf32>
    %cst_42 = arith.constant -1.000000e+01 : f32
    %cst_43 = arith.constant 1.000000e+01 : f32
    %120 = vector.broadcast %cst_42 : f32 to vector<8x1xf32>
    %121 = arith.maximumf %120, %119 : vector<8x1xf32>
    %122 = vector.broadcast %cst_43 : f32 to vector<8x1xf32>
    %123 = arith.minimumf %122, %121 : vector<8x1xf32>
    %124 = arith.mulf %0, %113 : vector<8x128xf32>
    %cst_44 = arith.constant dense<0.000000e+00> : vector<8xf32>
    %125 = vector.multi_reduction <add>, %124, %cst_44 [1] : vector<8x128xf32> to vector<8xf32>
    %126 = vector.shape_cast %125 : vector<8xf32> to vector<8x1xf32>
    %127 = math.exp %123 : vector<8x1xf32>
    %128 = arith.mulf %126, %127 : vector<8x1xf32>
    %129 = arith.addf %128, %116 : vector<8x1xf32>
    %130 = vector.shape_cast %129 : vector<8x1xf32> to vector<8x1xf32>
    %131 = vector.broadcast %130 : vector<8x1xf32> to vector<8x128xf32>
    %132 = arith.select %111, %131, %69 : vector<8x128xi1>, vector<8x128xf32>
    %133 = arith.addf %70, %123 : vector<8x1xf32>
    %134 = arith.index_cast %c1_i32 : i32 to index
    %c0_45 = arith.constant 0 : index
    %135 = vector.load %arg1[%134, %c0_45] : memref<128x128xf32, #tpu.memory_space<vmem>>, vector<1x128xf32>
    %136 = vector.broadcast %129 : vector<8x1xf32> to vector<8x128xf32>
    %137 = vector.broadcast %135 : vector<1x128xf32> to vector<8x128xf32>
    %138 = arith.mulf %136, %137 : vector<8x128xf32>
    %139 = arith.addf %76, %138 : vector<8x128xf32>
    %c2_i32 = arith.constant 2 : i32
    %140 = vector.broadcast %8 : vector<8x1xf32> to vector<8x128xf32>
    %141 = arith.mulf %139, %140 : vector<8x128xf32>
    %cst_46 = arith.constant dense<0.000000e+00> : vector<128xf32>
    %142 = vector.multi_reduction <add>, %141, %cst_46 [0] : vector<8x128xf32> to vector<128xf32>
    %143 = vector.shape_cast %142 : vector<128xf32> to vector<1x128xf32>
    %cst_47 = arith.constant 2.500000e-01 : f32
    %144 = vector.broadcast %cst_47 : f32 to vector<1x128xf32>
    %145 = arith.mulf %143, %144 : vector<1x128xf32>
    %146 = vector.broadcast %145 : vector<1x128xf32> to vector<8x128xf32>
    %147 = arith.subf %139, %146 : vector<8x128xf32>
    %148 = arith.mulf %147, %147 : vector<8x128xf32>
    %149 = vector.broadcast %8 : vector<8x1xf32> to vector<8x128xf32>
    %150 = arith.mulf %148, %149 : vector<8x128xf32>
    %cst_48 = arith.constant dense<0.000000e+00> : vector<128xf32>
    %151 = vector.multi_reduction <add>, %150, %cst_48 [0] : vector<8x128xf32> to vector<128xf32>
    %152 = vector.shape_cast %151 : vector<128xf32> to vector<1x128xf32>
    %cst_49 = arith.constant 2.500000e-01 : f32
    %153 = vector.broadcast %cst_49 : f32 to vector<1x128xf32>
    %154 = arith.mulf %152, %153 : vector<1x128xf32>
    %cst_50 = arith.constant 9.99999974E-6 : f32
    %155 = vector.broadcast %cst_50 : f32 to vector<1x128xf32>
    %156 = arith.addf %154, %155 : vector<1x128xf32>
    %157 = math.rsqrt %156 : vector<1x128xf32>
    %158 = arith.mulf %4, %157 : vector<1x128xf32>
    %159 = arith.mulf %145, %158 : vector<1x128xf32>
    %160 = arith.subf %5, %159 : vector<1x128xf32>
    %161 = vector.broadcast %158 : vector<1x128xf32> to vector<8x128xf32>
    %162 = arith.mulf %139, %161 : vector<8x128xf32>
    %163 = vector.broadcast %160 : vector<1x128xf32> to vector<8x128xf32>
    %164 = arith.addf %162, %163 : vector<8x128xf32>
    %cst_51 = arith.constant 0.000000e+00 : f32
    %165 = vector.broadcast %cst_51 : f32 to vector<8x128xf32>
    %166 = arith.maximumf %164, %165 : vector<8x128xf32>
    %cst_52 = arith.constant dense<0.000000e+00> : vector<8x128xf32>
    %167 = tpu.matmul %166, %1, %cst_52 {dimension_numbers = #tpu.dot_dimension_numbers<[1], [0], [0], [1], [0, 0, 1, 1], [], []>} : vector<8x128xf32>, vector<128x128xf32>, vector<8x128xf32> -> vector<8x128xf32>
    %168 = vector.broadcast %6 : vector<1x128xf32> to vector<8x128xf32>
    %169 = arith.addf %167, %168 : vector<8x128xf32>
    %cst_53 = arith.constant dense<0.000000e+00> : vector<8x128xf32>
    %170 = tpu.matmul %166, %2, %cst_53 {dimension_numbers = #tpu.dot_dimension_numbers<[1], [0], [0], [1], [0, 0, 1, 1], [], []>} : vector<8x128xf32>, vector<128x128xf32>, vector<8x128xf32> -> vector<8x128xf32>
    %171 = vector.broadcast %7 : vector<1x128xf32> to vector<8x128xf32>
    %172 = arith.addf %170, %171 : vector<8x128xf32>
    %173 = vector.broadcast %c2_i32 : i32 to vector<8x128xi32>
    %174 = arith.cmpi eq, %9, %173 : vector<8x128xi32>
    %175 = arith.extui %174 : vector<8x128xi1> to vector<8x128xi32>
    %176 = arith.sitofp %175 : vector<8x128xi32> to vector<8x128xf32>
    %177 = arith.mulf %169, %176 : vector<8x128xf32>
    %cst_54 = arith.constant dense<0.000000e+00> : vector<8xf32>
    %178 = vector.multi_reduction <add>, %177, %cst_54 [1] : vector<8x128xf32> to vector<8xf32>
    %179 = vector.shape_cast %178 : vector<8xf32> to vector<8x1xf32>
    %180 = arith.mulf %172, %176 : vector<8x128xf32>
    %cst_55 = arith.constant dense<0.000000e+00> : vector<8xf32>
    %181 = vector.multi_reduction <add>, %180, %cst_55 [1] : vector<8x128xf32> to vector<8xf32>
    %182 = vector.shape_cast %181 : vector<8xf32> to vector<8x1xf32>
    %cst_56 = arith.constant -1.000000e+01 : f32
    %cst_57 = arith.constant 1.000000e+01 : f32
    %183 = vector.broadcast %cst_56 : f32 to vector<8x1xf32>
    %184 = arith.maximumf %183, %182 : vector<8x1xf32>
    %185 = vector.broadcast %cst_57 : f32 to vector<8x1xf32>
    %186 = arith.minimumf %185, %184 : vector<8x1xf32>
    %187 = arith.mulf %0, %176 : vector<8x128xf32>
    %cst_58 = arith.constant dense<0.000000e+00> : vector<8xf32>
    %188 = vector.multi_reduction <add>, %187, %cst_58 [1] : vector<8x128xf32> to vector<8xf32>
    %189 = vector.shape_cast %188 : vector<8xf32> to vector<8x1xf32>
    %190 = math.exp %186 : vector<8x1xf32>
    %191 = arith.mulf %189, %190 : vector<8x1xf32>
    %192 = arith.addf %191, %179 : vector<8x1xf32>
    %193 = vector.shape_cast %192 : vector<8x1xf32> to vector<8x1xf32>
    %194 = vector.broadcast %193 : vector<8x1xf32> to vector<8x128xf32>
    %195 = arith.select %174, %194, %132 : vector<8x128xi1>, vector<8x128xf32>
    %196 = arith.addf %133, %186 : vector<8x1xf32>
    %197 = arith.index_cast %c2_i32 : i32 to index
    %c0_59 = arith.constant 0 : index
    %198 = vector.load %arg1[%197, %c0_59] : memref<128x128xf32, #tpu.memory_space<vmem>>, vector<1x128xf32>
    %199 = vector.broadcast %192 : vector<8x1xf32> to vector<8x128xf32>
    %200 = vector.broadcast %198 : vector<1x128xf32> to vector<8x128xf32>
    %201 = arith.mulf %199, %200 : vector<8x128xf32>
    %202 = arith.addf %139, %201 : vector<8x128xf32>
    %c3_i32 = arith.constant 3 : i32
    %203 = vector.broadcast %8 : vector<8x1xf32> to vector<8x128xf32>
    %204 = arith.mulf %202, %203 : vector<8x128xf32>
    %cst_60 = arith.constant dense<0.000000e+00> : vector<128xf32>
    %205 = vector.multi_reduction <add>, %204, %cst_60 [0] : vector<8x128xf32> to vector<128xf32>
    %206 = vector.shape_cast %205 : vector<128xf32> to vector<1x128xf32>
    %cst_61 = arith.constant 2.500000e-01 : f32
    %207 = vector.broadcast %cst_61 : f32 to vector<1x128xf32>
    %208 = arith.mulf %206, %207 : vector<1x128xf32>
    %209 = vector.broadcast %208 : vector<1x128xf32> to vector<8x128xf32>
    %210 = arith.subf %202, %209 : vector<8x128xf32>
    %211 = arith.mulf %210, %210 : vector<8x128xf32>
    %212 = vector.broadcast %8 : vector<8x1xf32> to vector<8x128xf32>
    %213 = arith.mulf %211, %212 : vector<8x128xf32>
    %cst_62 = arith.constant dense<0.000000e+00> : vector<128xf32>
    %214 = vector.multi_reduction <add>, %213, %cst_62 [0] : vector<8x128xf32> to vector<128xf32>
    %215 = vector.shape_cast %214 : vector<128xf32> to vector<1x128xf32>
    %cst_63 = arith.constant 2.500000e-01 : f32
    %216 = vector.broadcast %cst_63 : f32 to vector<1x128xf32>
    %217 = arith.mulf %215, %216 : vector<1x128xf32>
    %cst_64 = arith.constant 9.99999974E-6 : f32
    %218 = vector.broadcast %cst_64 : f32 to vector<1x128xf32>
    %219 = arith.addf %217, %218 : vector<1x128xf32>
    %220 = math.rsqrt %219 : vector<1x128xf32>
    %221 = arith.mulf %4, %220 : vector<1x128xf32>
    %222 = arith.mulf %208, %221 : vector<1x128xf32>
    %223 = arith.subf %5, %222 : vector<1x128xf32>
    %224 = vector.broadcast %221 : vector<1x128xf32> to vector<8x128xf32>
    %225 = arith.mulf %202, %224 : vector<8x128xf32>
    %226 = vector.broadcast %223 : vector<1x128xf32> to vector<8x128xf32>
    %227 = arith.addf %225, %226 : vector<8x128xf32>
    %cst_65 = arith.constant 0.000000e+00 : f32
    %228 = vector.broadcast %cst_65 : f32 to vector<8x128xf32>
    %229 = arith.maximumf %227, %228 : vector<8x128xf32>
    %cst_66 = arith.constant dense<0.000000e+00> : vector<8x128xf32>
    %230 = tpu.matmul %229, %1, %cst_66 {dimension_numbers = #tpu.dot_dimension_numbers<[1], [0], [0], [1], [0, 0, 1, 1], [], []>} : vector<8x128xf32>, vector<128x128xf32>, vector<8x128xf32> -> vector<8x128xf32>
    %231 = vector.broadcast %6 : vector<1x128xf32> to vector<8x128xf32>
    %232 = arith.addf %230, %231 : vector<8x128xf32>
    %cst_67 = arith.constant dense<0.000000e+00> : vector<8x128xf32>
    %233 = tpu.matmul %229, %2, %cst_67 {dimension_numbers = #tpu.dot_dimension_numbers<[1], [0], [0], [1], [0, 0, 1, 1], [], []>} : vector<8x128xf32>, vector<128x128xf32>, vector<8x128xf32> -> vector<8x128xf32>
    %234 = vector.broadcast %7 : vector<1x128xf32> to vector<8x128xf32>
    %235 = arith.addf %233, %234 : vector<8x128xf32>
    %236 = vector.broadcast %c3_i32 : i32 to vector<8x128xi32>
    %237 = arith.cmpi eq, %9, %236 : vector<8x128xi32>
    %238 = arith.extui %237 : vector<8x128xi1> to vector<8x128xi32>
    %239 = arith.sitofp %238 : vector<8x128xi32> to vector<8x128xf32>
    %240 = arith.mulf %232, %239 : vector<8x128xf32>
    %cst_68 = arith.constant dense<0.000000e+00> : vector<8xf32>
    %241 = vector.multi_reduction <add>, %240, %cst_68 [1] : vector<8x128xf32> to vector<8xf32>
    %242 = vector.shape_cast %241 : vector<8xf32> to vector<8x1xf32>
    %243 = arith.mulf %235, %239 : vector<8x128xf32>
    %cst_69 = arith.constant dense<0.000000e+00> : vector<8xf32>
    %244 = vector.multi_reduction <add>, %243, %cst_69 [1] : vector<8x128xf32> to vector<8xf32>
    %245 = vector.shape_cast %244 : vector<8xf32> to vector<8x1xf32>
    %cst_70 = arith.constant -1.000000e+01 : f32
    %cst_71 = arith.constant 1.000000e+01 : f32
    %246 = vector.broadcast %cst_70 : f32 to vector<8x1xf32>
    %247 = arith.maximumf %246, %245 : vector<8x1xf32>
    %248 = vector.broadcast %cst_71 : f32 to vector<8x1xf32>
    %249 = arith.minimumf %248, %247 : vector<8x1xf32>
    %250 = arith.mulf %0, %239 : vector<8x128xf32>
    %cst_72 = arith.constant dense<0.000000e+00> : vector<8xf32>
    %251 = vector.multi_reduction <add>, %250, %cst_72 [1] : vector<8x128xf32> to vector<8xf32>
    %252 = vector.shape_cast %251 : vector<8xf32> to vector<8x1xf32>
    %253 = math.exp %249 : vector<8x1xf32>
    %254 = arith.mulf %252, %253 : vector<8x1xf32>
    %255 = arith.addf %254, %242 : vector<8x1xf32>
    %256 = vector.shape_cast %255 : vector<8x1xf32> to vector<8x1xf32>
    %257 = vector.broadcast %256 : vector<8x1xf32> to vector<8x128xf32>
    %258 = arith.select %237, %257, %195 : vector<8x128xi1>, vector<8x128xf32>
    %259 = arith.addf %196, %249 : vector<8x1xf32>
    %260 = arith.index_cast %c3_i32 : i32 to index
    %c0_73 = arith.constant 0 : index
    %261 = vector.load %arg1[%260, %c0_73] : memref<128x128xf32, #tpu.memory_space<vmem>>, vector<1x128xf32>
    %262 = vector.broadcast %255 : vector<8x1xf32> to vector<8x128xf32>
    %263 = vector.broadcast %261 : vector<1x128xf32> to vector<8x128xf32>
    %264 = arith.mulf %262, %263 : vector<8x128xf32>
    %265 = arith.addf %202, %264 : vector<8x128xf32>
    %c4_i32 = arith.constant 4 : i32
    %266 = vector.broadcast %8 : vector<8x1xf32> to vector<8x128xf32>
    %267 = arith.mulf %265, %266 : vector<8x128xf32>
    %cst_74 = arith.constant dense<0.000000e+00> : vector<128xf32>
    %268 = vector.multi_reduction <add>, %267, %cst_74 [0] : vector<8x128xf32> to vector<128xf32>
    %269 = vector.shape_cast %268 : vector<128xf32> to vector<1x128xf32>
    %cst_75 = arith.constant 2.500000e-01 : f32
    %270 = vector.broadcast %cst_75 : f32 to vector<1x128xf32>
    %271 = arith.mulf %269, %270 : vector<1x128xf32>
    %272 = vector.broadcast %271 : vector<1x128xf32> to vector<8x128xf32>
    %273 = arith.subf %265, %272 : vector<8x128xf32>
    %274 = arith.mulf %273, %273 : vector<8x128xf32>
    %275 = vector.broadcast %8 : vector<8x1xf32> to vector<8x128xf32>
    %276 = arith.mulf %274, %275 : vector<8x128xf32>
    %cst_76 = arith.constant dense<0.000000e+00> : vector<128xf32>
    %277 = vector.multi_reduction <add>, %276, %cst_76 [0] : vector<8x128xf32> to vector<128xf32>
    %278 = vector.shape_cast %277 : vector<128xf32> to vector<1x128xf32>
    %cst_77 = arith.constant 2.500000e-01 : f32
    %279 = vector.broadcast %cst_77 : f32 to vector<1x128xf32>
    %280 = arith.mulf %278, %279 : vector<1x128xf32>
    %cst_78 = arith.constant 9.99999974E-6 : f32
    %281 = vector.broadcast %cst_78 : f32 to vector<1x128xf32>
    %282 = arith.addf %280, %281 : vector<1x128xf32>
    %283 = math.rsqrt %282 : vector<1x128xf32>
    %284 = arith.mulf %4, %283 : vector<1x128xf32>
    %285 = arith.mulf %271, %284 : vector<1x128xf32>
    %286 = arith.subf %5, %285 : vector<1x128xf32>
    %287 = vector.broadcast %284 : vector<1x128xf32> to vector<8x128xf32>
    %288 = arith.mulf %265, %287 : vector<8x128xf32>
    %289 = vector.broadcast %286 : vector<1x128xf32> to vector<8x128xf32>
    %290 = arith.addf %288, %289 : vector<8x128xf32>
    %cst_79 = arith.constant 0.000000e+00 : f32
    %291 = vector.broadcast %cst_79 : f32 to vector<8x128xf32>
    %292 = arith.maximumf %290, %291 : vector<8x128xf32>
    %cst_80 = arith.constant dense<0.000000e+00> : vector<8x128xf32>
    %293 = tpu.matmul %292, %1, %cst_80 {dimension_numbers = #tpu.dot_dimension_numbers<[1], [0], [0], [1], [0, 0, 1, 1], [], []>} : vector<8x128xf32>, vector<128x128xf32>, vector<8x128xf32> -> vector<8x128xf32>
    %294 = vector.broadcast %6 : vector<1x128xf32> to vector<8x128xf32>
    %295 = arith.addf %293, %294 : vector<8x128xf32>
    %cst_81 = arith.constant dense<0.000000e+00> : vector<8x128xf32>
    %296 = tpu.matmul %292, %2, %cst_81 {dimension_numbers = #tpu.dot_dimension_numbers<[1], [0], [0], [1], [0, 0, 1, 1], [], []>} : vector<8x128xf32>, vector<128x128xf32>, vector<8x128xf32> -> vector<8x128xf32>
    %297 = vector.broadcast %7 : vector<1x128xf32> to vector<8x128xf32>
    %298 = arith.addf %296, %297 : vector<8x128xf32>
    %299 = vector.broadcast %c4_i32 : i32 to vector<8x128xi32>
    %300 = arith.cmpi eq, %9, %299 : vector<8x128xi32>
    %301 = arith.extui %300 : vector<8x128xi1> to vector<8x128xi32>
    %302 = arith.sitofp %301 : vector<8x128xi32> to vector<8x128xf32>
    %303 = arith.mulf %295, %302 : vector<8x128xf32>
    %cst_82 = arith.constant dense<0.000000e+00> : vector<8xf32>
    %304 = vector.multi_reduction <add>, %303, %cst_82 [1] : vector<8x128xf32> to vector<8xf32>
    %305 = vector.shape_cast %304 : vector<8xf32> to vector<8x1xf32>
    %306 = arith.mulf %298, %302 : vector<8x128xf32>
    %cst_83 = arith.constant dense<0.000000e+00> : vector<8xf32>
    %307 = vector.multi_reduction <add>, %306, %cst_83 [1] : vector<8x128xf32> to vector<8xf32>
    %308 = vector.shape_cast %307 : vector<8xf32> to vector<8x1xf32>
    %cst_84 = arith.constant -1.000000e+01 : f32
    %cst_85 = arith.constant 1.000000e+01 : f32
    %309 = vector.broadcast %cst_84 : f32 to vector<8x1xf32>
    %310 = arith.maximumf %309, %308 : vector<8x1xf32>
    %311 = vector.broadcast %cst_85 : f32 to vector<8x1xf32>
    %312 = arith.minimumf %311, %310 : vector<8x1xf32>
    %313 = arith.mulf %0, %302 : vector<8x128xf32>
    %cst_86 = arith.constant dense<0.000000e+00> : vector<8xf32>
    %314 = vector.multi_reduction <add>, %313, %cst_86 [1] : vector<8x128xf32> to vector<8xf32>
    %315 = vector.shape_cast %314 : vector<8xf32> to vector<8x1xf32>
    %316 = math.exp %312 : vector<8x1xf32>
    %317 = arith.mulf %315, %316 : vector<8x1xf32>
    %318 = arith.addf %317, %305 : vector<8x1xf32>
    %319 = vector.shape_cast %318 : vector<8x1xf32> to vector<8x1xf32>
    %320 = vector.broadcast %319 : vector<8x1xf32> to vector<8x128xf32>
    %321 = arith.select %300, %320, %258 : vector<8x128xi1>, vector<8x128xf32>
    %322 = arith.addf %259, %312 : vector<8x1xf32>
    %323 = arith.index_cast %c4_i32 : i32 to index
    %c0_87 = arith.constant 0 : index
    %324 = vector.load %arg1[%323, %c0_87] : memref<128x128xf32, #tpu.memory_space<vmem>>, vector<1x128xf32>
    %325 = vector.broadcast %318 : vector<8x1xf32> to vector<8x128xf32>
    %326 = vector.broadcast %324 : vector<1x128xf32> to vector<8x128xf32>
    %327 = arith.mulf %325, %326 : vector<8x128xf32>
    %328 = arith.addf %265, %327 : vector<8x128xf32>
    %c5_i32 = arith.constant 5 : i32
    %329 = vector.broadcast %8 : vector<8x1xf32> to vector<8x128xf32>
    %330 = arith.mulf %328, %329 : vector<8x128xf32>
    %cst_88 = arith.constant dense<0.000000e+00> : vector<128xf32>
    %331 = vector.multi_reduction <add>, %330, %cst_88 [0] : vector<8x128xf32> to vector<128xf32>
    %332 = vector.shape_cast %331 : vector<128xf32> to vector<1x128xf32>
    %cst_89 = arith.constant 2.500000e-01 : f32
    %333 = vector.broadcast %cst_89 : f32 to vector<1x128xf32>
    %334 = arith.mulf %332, %333 : vector<1x128xf32>
    %335 = vector.broadcast %334 : vector<1x128xf32> to vector<8x128xf32>
    %336 = arith.subf %328, %335 : vector<8x128xf32>
    %337 = arith.mulf %336, %336 : vector<8x128xf32>
    %338 = vector.broadcast %8 : vector<8x1xf32> to vector<8x128xf32>
    %339 = arith.mulf %337, %338 : vector<8x128xf32>
    %cst_90 = arith.constant dense<0.000000e+00> : vector<128xf32>
    %340 = vector.multi_reduction <add>, %339, %cst_90 [0] : vector<8x128xf32> to vector<128xf32>
    %341 = vector.shape_cast %340 : vector<128xf32> to vector<1x128xf32>
    %cst_91 = arith.constant 2.500000e-01 : f32
    %342 = vector.broadcast %cst_91 : f32 to vector<1x128xf32>
    %343 = arith.mulf %341, %342 : vector<1x128xf32>
    %cst_92 = arith.constant 9.99999974E-6 : f32
    %344 = vector.broadcast %cst_92 : f32 to vector<1x128xf32>
    %345 = arith.addf %343, %344 : vector<1x128xf32>
    %346 = math.rsqrt %345 : vector<1x128xf32>
    %347 = arith.mulf %4, %346 : vector<1x128xf32>
    %348 = arith.mulf %334, %347 : vector<1x128xf32>
    %349 = arith.subf %5, %348 : vector<1x128xf32>
    %350 = vector.broadcast %347 : vector<1x128xf32> to vector<8x128xf32>
    %351 = arith.mulf %328, %350 : vector<8x128xf32>
    %352 = vector.broadcast %349 : vector<1x128xf32> to vector<8x128xf32>
    %353 = arith.addf %351, %352 : vector<8x128xf32>
    %cst_93 = arith.constant 0.000000e+00 : f32
    %354 = vector.broadcast %cst_93 : f32 to vector<8x128xf32>
    %355 = arith.maximumf %353, %354 : vector<8x128xf32>
    %cst_94 = arith.constant dense<0.000000e+00> : vector<8x128xf32>
    %356 = tpu.matmul %355, %1, %cst_94 {dimension_numbers = #tpu.dot_dimension_numbers<[1], [0], [0], [1], [0, 0, 1, 1], [], []>} : vector<8x128xf32>, vector<128x128xf32>, vector<8x128xf32> -> vector<8x128xf32>
    %357 = vector.broadcast %6 : vector<1x128xf32> to vector<8x128xf32>
    %358 = arith.addf %356, %357 : vector<8x128xf32>
    %cst_95 = arith.constant dense<0.000000e+00> : vector<8x128xf32>
    %359 = tpu.matmul %355, %2, %cst_95 {dimension_numbers = #tpu.dot_dimension_numbers<[1], [0], [0], [1], [0, 0, 1, 1], [], []>} : vector<8x128xf32>, vector<128x128xf32>, vector<8x128xf32> -> vector<8x128xf32>
    %360 = vector.broadcast %7 : vector<1x128xf32> to vector<8x128xf32>
    %361 = arith.addf %359, %360 : vector<8x128xf32>
    %362 = vector.broadcast %c5_i32 : i32 to vector<8x128xi32>
    %363 = arith.cmpi eq, %9, %362 : vector<8x128xi32>
    %364 = arith.extui %363 : vector<8x128xi1> to vector<8x128xi32>
    %365 = arith.sitofp %364 : vector<8x128xi32> to vector<8x128xf32>
    %366 = arith.mulf %358, %365 : vector<8x128xf32>
    %cst_96 = arith.constant dense<0.000000e+00> : vector<8xf32>
    %367 = vector.multi_reduction <add>, %366, %cst_96 [1] : vector<8x128xf32> to vector<8xf32>
    %368 = vector.shape_cast %367 : vector<8xf32> to vector<8x1xf32>
    %369 = arith.mulf %361, %365 : vector<8x128xf32>
    %cst_97 = arith.constant dense<0.000000e+00> : vector<8xf32>
    %370 = vector.multi_reduction <add>, %369, %cst_97 [1] : vector<8x128xf32> to vector<8xf32>
    %371 = vector.shape_cast %370 : vector<8xf32> to vector<8x1xf32>
    %cst_98 = arith.constant -1.000000e+01 : f32
    %cst_99 = arith.constant 1.000000e+01 : f32
    %372 = vector.broadcast %cst_98 : f32 to vector<8x1xf32>
    %373 = arith.maximumf %372, %371 : vector<8x1xf32>
    %374 = vector.broadcast %cst_99 : f32 to vector<8x1xf32>
    %375 = arith.minimumf %374, %373 : vector<8x1xf32>
    %376 = arith.mulf %0, %365 : vector<8x128xf32>
    %cst_100 = arith.constant dense<0.000000e+00> : vector<8xf32>
    %377 = vector.multi_reduction <add>, %376, %cst_100 [1] : vector<8x128xf32> to vector<8xf32>
    %378 = vector.shape_cast %377 : vector<8xf32> to vector<8x1xf32>
    %379 = math.exp %375 : vector<8x1xf32>
    %380 = arith.mulf %378, %379 : vector<8x1xf32>
    %381 = arith.addf %380, %368 : vector<8x1xf32>
    %382 = vector.shape_cast %381 : vector<8x1xf32> to vector<8x1xf32>
    %383 = vector.broadcast %382 : vector<8x1xf32> to vector<8x128xf32>
    %384 = arith.select %363, %383, %321 : vector<8x128xi1>, vector<8x128xf32>
    %385 = arith.addf %322, %375 : vector<8x1xf32>
    %386 = arith.index_cast %c5_i32 : i32 to index
    %c0_101 = arith.constant 0 : index
    %387 = vector.load %arg1[%386, %c0_101] : memref<128x128xf32, #tpu.memory_space<vmem>>, vector<1x128xf32>
    %388 = vector.broadcast %381 : vector<8x1xf32> to vector<8x128xf32>
    %389 = vector.broadcast %387 : vector<1x128xf32> to vector<8x128xf32>
    %390 = arith.mulf %388, %389 : vector<8x128xf32>
    %391 = arith.addf %328, %390 : vector<8x128xf32>
    %c6_i32 = arith.constant 6 : i32
    %392 = vector.broadcast %8 : vector<8x1xf32> to vector<8x128xf32>
    %393 = arith.mulf %391, %392 : vector<8x128xf32>
    %cst_102 = arith.constant dense<0.000000e+00> : vector<128xf32>
    %394 = vector.multi_reduction <add>, %393, %cst_102 [0] : vector<8x128xf32> to vector<128xf32>
    %395 = vector.shape_cast %394 : vector<128xf32> to vector<1x128xf32>
    %cst_103 = arith.constant 2.500000e-01 : f32
    %396 = vector.broadcast %cst_103 : f32 to vector<1x128xf32>
    %397 = arith.mulf %395, %396 : vector<1x128xf32>
    %398 = vector.broadcast %397 : vector<1x128xf32> to vector<8x128xf32>
    %399 = arith.subf %391, %398 : vector<8x128xf32>
    %400 = arith.mulf %399, %399 : vector<8x128xf32>
    %401 = vector.broadcast %8 : vector<8x1xf32> to vector<8x128xf32>
    %402 = arith.mulf %400, %401 : vector<8x128xf32>
    %cst_104 = arith.constant dense<0.000000e+00> : vector<128xf32>
    %403 = vector.multi_reduction <add>, %402, %cst_104 [0] : vector<8x128xf32> to vector<128xf32>
    %404 = vector.shape_cast %403 : vector<128xf32> to vector<1x128xf32>
    %cst_105 = arith.constant 2.500000e-01 : f32
    %405 = vector.broadcast %cst_105 : f32 to vector<1x128xf32>
    %406 = arith.mulf %404, %405 : vector<1x128xf32>
    %cst_106 = arith.constant 9.99999974E-6 : f32
    %407 = vector.broadcast %cst_106 : f32 to vector<1x128xf32>
    %408 = arith.addf %406, %407 : vector<1x128xf32>
    %409 = math.rsqrt %408 : vector<1x128xf32>
    %410 = arith.mulf %4, %409 : vector<1x128xf32>
    %411 = arith.mulf %397, %410 : vector<1x128xf32>
    %412 = arith.subf %5, %411 : vector<1x128xf32>
    %413 = vector.broadcast %410 : vector<1x128xf32> to vector<8x128xf32>
    %414 = arith.mulf %391, %413 : vector<8x128xf32>
    %415 = vector.broadcast %412 : vector<1x128xf32> to vector<8x128xf32>
    %416 = arith.addf %414, %415 : vector<8x128xf32>
    %cst_107 = arith.constant 0.000000e+00 : f32
    %417 = vector.broadcast %cst_107 : f32 to vector<8x128xf32>
    %418 = arith.maximumf %416, %417 : vector<8x128xf32>
    %cst_108 = arith.constant dense<0.000000e+00> : vector<8x128xf32>
    %419 = tpu.matmul %418, %1, %cst_108 {dimension_numbers = #tpu.dot_dimension_numbers<[1], [0], [0], [1], [0, 0, 1, 1], [], []>} : vector<8x128xf32>, vector<128x128xf32>, vector<8x128xf32> -> vector<8x128xf32>
    %420 = vector.broadcast %6 : vector<1x128xf32> to vector<8x128xf32>
    %421 = arith.addf %419, %420 : vector<8x128xf32>
    %cst_109 = arith.constant dense<0.000000e+00> : vector<8x128xf32>
    %422 = tpu.matmul %418, %2, %cst_109 {dimension_numbers = #tpu.dot_dimension_numbers<[1], [0], [0], [1], [0, 0, 1, 1], [], []>} : vector<8x128xf32>, vector<128x128xf32>, vector<8x128xf32> -> vector<8x128xf32>
    %423 = vector.broadcast %7 : vector<1x128xf32> to vector<8x128xf32>
    %424 = arith.addf %422, %423 : vector<8x128xf32>
    %425 = vector.broadcast %c6_i32 : i32 to vector<8x128xi32>
    %426 = arith.cmpi eq, %9, %425 : vector<8x128xi32>
    %427 = arith.extui %426 : vector<8x128xi1> to vector<8x128xi32>
    %428 = arith.sitofp %427 : vector<8x128xi32> to vector<8x128xf32>
    %429 = arith.mulf %421, %428 : vector<8x128xf32>
    %cst_110 = arith.constant dense<0.000000e+00> : vector<8xf32>
    %430 = vector.multi_reduction <add>, %429, %cst_110 [1] : vector<8x128xf32> to vector<8xf32>
    %431 = vector.shape_cast %430 : vector<8xf32> to vector<8x1xf32>
    %432 = arith.mulf %424, %428 : vector<8x128xf32>
    %cst_111 = arith.constant dense<0.000000e+00> : vector<8xf32>
    %433 = vector.multi_reduction <add>, %432, %cst_111 [1] : vector<8x128xf32> to vector<8xf32>
    %434 = vector.shape_cast %433 : vector<8xf32> to vector<8x1xf32>
    %cst_112 = arith.constant -1.000000e+01 : f32
    %cst_113 = arith.constant 1.000000e+01 : f32
    %435 = vector.broadcast %cst_112 : f32 to vector<8x1xf32>
    %436 = arith.maximumf %435, %434 : vector<8x1xf32>
    %437 = vector.broadcast %cst_113 : f32 to vector<8x1xf32>
    %438 = arith.minimumf %437, %436 : vector<8x1xf32>
    %439 = arith.mulf %0, %428 : vector<8x128xf32>
    %cst_114 = arith.constant dense<0.000000e+00> : vector<8xf32>
    %440 = vector.multi_reduction <add>, %439, %cst_114 [1] : vector<8x128xf32> to vector<8xf32>
    %441 = vector.shape_cast %440 : vector<8xf32> to vector<8x1xf32>
    %442 = math.exp %438 : vector<8x1xf32>
    %443 = arith.mulf %441, %442 : vector<8x1xf32>
    %444 = arith.addf %443, %431 : vector<8x1xf32>
    %445 = vector.shape_cast %444 : vector<8x1xf32> to vector<8x1xf32>
    %446 = vector.broadcast %445 : vector<8x1xf32> to vector<8x128xf32>
    %447 = arith.select %426, %446, %384 : vector<8x128xi1>, vector<8x128xf32>
    %448 = arith.addf %385, %438 : vector<8x1xf32>
    %449 = arith.index_cast %c6_i32 : i32 to index
    %c0_115 = arith.constant 0 : index
    %450 = vector.load %arg1[%449, %c0_115] : memref<128x128xf32, #tpu.memory_space<vmem>>, vector<1x128xf32>
    %451 = vector.broadcast %444 : vector<8x1xf32> to vector<8x128xf32>
    %452 = vector.broadcast %450 : vector<1x128xf32> to vector<8x128xf32>
    %453 = arith.mulf %451, %452 : vector<8x128xf32>
    %454 = arith.addf %391, %453 : vector<8x128xf32>
    %c7_i32 = arith.constant 7 : i32
    %455 = vector.broadcast %8 : vector<8x1xf32> to vector<8x128xf32>
    %456 = arith.mulf %454, %455 : vector<8x128xf32>
    %cst_116 = arith.constant dense<0.000000e+00> : vector<128xf32>
    %457 = vector.multi_reduction <add>, %456, %cst_116 [0] : vector<8x128xf32> to vector<128xf32>
    %458 = vector.shape_cast %457 : vector<128xf32> to vector<1x128xf32>
    %cst_117 = arith.constant 2.500000e-01 : f32
    %459 = vector.broadcast %cst_117 : f32 to vector<1x128xf32>
    %460 = arith.mulf %458, %459 : vector<1x128xf32>
    %461 = vector.broadcast %460 : vector<1x128xf32> to vector<8x128xf32>
    %462 = arith.subf %454, %461 : vector<8x128xf32>
    %463 = arith.mulf %462, %462 : vector<8x128xf32>
    %464 = vector.broadcast %8 : vector<8x1xf32> to vector<8x128xf32>
    %465 = arith.mulf %463, %464 : vector<8x128xf32>
    %cst_118 = arith.constant dense<0.000000e+00> : vector<128xf32>
    %466 = vector.multi_reduction <add>, %465, %cst_118 [0] : vector<8x128xf32> to vector<128xf32>
    %467 = vector.shape_cast %466 : vector<128xf32> to vector<1x128xf32>
    %cst_119 = arith.constant 2.500000e-01 : f32
    %468 = vector.broadcast %cst_119 : f32 to vector<1x128xf32>
    %469 = arith.mulf %467, %468 : vector<1x128xf32>
    %cst_120 = arith.constant 9.99999974E-6 : f32
    %470 = vector.broadcast %cst_120 : f32 to vector<1x128xf32>
    %471 = arith.addf %469, %470 : vector<1x128xf32>
    %472 = math.rsqrt %471 : vector<1x128xf32>
    %473 = arith.mulf %4, %472 : vector<1x128xf32>
    %474 = arith.mulf %460, %473 : vector<1x128xf32>
    %475 = arith.subf %5, %474 : vector<1x128xf32>
    %476 = vector.broadcast %473 : vector<1x128xf32> to vector<8x128xf32>
    %477 = arith.mulf %454, %476 : vector<8x128xf32>
    %478 = vector.broadcast %475 : vector<1x128xf32> to vector<8x128xf32>
    %479 = arith.addf %477, %478 : vector<8x128xf32>
    %cst_121 = arith.constant 0.000000e+00 : f32
    %480 = vector.broadcast %cst_121 : f32 to vector<8x128xf32>
    %481 = arith.maximumf %479, %480 : vector<8x128xf32>
    %cst_122 = arith.constant dense<0.000000e+00> : vector<8x128xf32>
    %482 = tpu.matmul %481, %1, %cst_122 {dimension_numbers = #tpu.dot_dimension_numbers<[1], [0], [0], [1], [0, 0, 1, 1], [], []>} : vector<8x128xf32>, vector<128x128xf32>, vector<8x128xf32> -> vector<8x128xf32>
    %483 = vector.broadcast %6 : vector<1x128xf32> to vector<8x128xf32>
    %484 = arith.addf %482, %483 : vector<8x128xf32>
    %cst_123 = arith.constant dense<0.000000e+00> : vector<8x128xf32>
    %485 = tpu.matmul %481, %2, %cst_123 {dimension_numbers = #tpu.dot_dimension_numbers<[1], [0], [0], [1], [0, 0, 1, 1], [], []>} : vector<8x128xf32>, vector<128x128xf32>, vector<8x128xf32> -> vector<8x128xf32>
    %486 = vector.broadcast %7 : vector<1x128xf32> to vector<8x128xf32>
    %487 = arith.addf %485, %486 : vector<8x128xf32>
    %488 = vector.broadcast %c7_i32 : i32 to vector<8x128xi32>
    %489 = arith.cmpi eq, %9, %488 : vector<8x128xi32>
    %490 = arith.extui %489 : vector<8x128xi1> to vector<8x128xi32>
    %491 = arith.sitofp %490 : vector<8x128xi32> to vector<8x128xf32>
    %492 = arith.mulf %484, %491 : vector<8x128xf32>
    %cst_124 = arith.constant dense<0.000000e+00> : vector<8xf32>
    %493 = vector.multi_reduction <add>, %492, %cst_124 [1] : vector<8x128xf32> to vector<8xf32>
    %494 = vector.shape_cast %493 : vector<8xf32> to vector<8x1xf32>
    %495 = arith.mulf %487, %491 : vector<8x128xf32>
    %cst_125 = arith.constant dense<0.000000e+00> : vector<8xf32>
    %496 = vector.multi_reduction <add>, %495, %cst_125 [1] : vector<8x128xf32> to vector<8xf32>
    %497 = vector.shape_cast %496 : vector<8xf32> to vector<8x1xf32>
    %cst_126 = arith.constant -1.000000e+01 : f32
    %cst_127 = arith.constant 1.000000e+01 : f32
    %498 = vector.broadcast %cst_126 : f32 to vector<8x1xf32>
    %499 = arith.maximumf %498, %497 : vector<8x1xf32>
    %500 = vector.broadcast %cst_127 : f32 to vector<8x1xf32>
    %501 = arith.minimumf %500, %499 : vector<8x1xf32>
    %502 = arith.mulf %0, %491 : vector<8x128xf32>
    %cst_128 = arith.constant dense<0.000000e+00> : vector<8xf32>
    %503 = vector.multi_reduction <add>, %502, %cst_128 [1] : vector<8x128xf32> to vector<8xf32>
    %504 = vector.shape_cast %503 : vector<8xf32> to vector<8x1xf32>
    %505 = math.exp %501 : vector<8x1xf32>
    %506 = arith.mulf %504, %505 : vector<8x1xf32>
    %507 = arith.addf %506, %494 : vector<8x1xf32>
    %508 = vector.shape_cast %507 : vector<8x1xf32> to vector<8x1xf32>
    %509 = vector.broadcast %508 : vector<8x1xf32> to vector<8x128xf32>
    %510 = arith.select %489, %509, %447 : vector<8x128xi1>, vector<8x128xf32>
    %511 = arith.addf %448, %501 : vector<8x1xf32>
    %512 = arith.index_cast %c7_i32 : i32 to index
    %c0_129 = arith.constant 0 : index
    %513 = vector.load %arg1[%512, %c0_129] : memref<128x128xf32, #tpu.memory_space<vmem>>, vector<1x128xf32>
    %514 = vector.broadcast %507 : vector<8x1xf32> to vector<8x128xf32>
    %515 = vector.broadcast %513 : vector<1x128xf32> to vector<8x128xf32>
    %516 = arith.mulf %514, %515 : vector<8x128xf32>
    %517 = arith.addf %454, %516 : vector<8x128xf32>
    %c8_i32 = arith.constant 8 : i32
    %c0_130 = arith.constant 0 : index
    %c0_131 = arith.constant 0 : index
    %518 = vector.load %arg10[%c0_130, %c0_131] : memref<8x128xf32, #tpu.memory_space<vmem>>, vector<8x128xf32>
    tpu.vector_store %arg10[%c0_130, %c0_131], %510 {strides = array<i32>} : memref<8x128xf32, #tpu.memory_space<vmem>>, vector<8x128xf32>,
    %c0_132 = arith.constant 0 : index
    %c0_133 = arith.constant 0 : index
    %519 = vector.load %arg11[%c0_132, %c0_133] : memref<8x1xf32, #tpu.memory_space<vmem>>, vector<8x1xf32>
    tpu.vector_store %arg11[%c0_132, %c0_133], %511 {strides = array<i32>} : memref<8x1xf32, #tpu.memory_space<vmem>>, vector<8x1xf32>,
    return
  }
}

</mosaic_0001>

<bundles_post_ra>
// kernel: tpu_custom_call.1
= control target key start
LH: loop header
LB: loop body
LE: loop exit
PB: predicated region body
PF: predicated region fallthrough
CT: control target
= control target key end

     0   :  { %17 = vsyncpa [#allocation3], 0  ;;  %s3900_s0 = inlined_call_operand.vmem [shape: f32[8,128], index: 0, kind: input, shape index: {}]   ;;  %s3901_s1 = inlined_call_operand.hbm [shape: f32[128,128], index: 1, kind: input, shape index: {}]   ;;  %s3902_s2 = inlined_call_operand.vmem [shape: f32[1,128], index: 2, kind: input, shape index: {}]   ;;  %s3903_s3 = inlined_call_operand.vmem [shape: f32[1,128], index: 3, kind: input, shape index: {}]   ;;  %s3904_s4 = inlined_call_operand.vmem [shape: f32[1,128], index: 4, kind: input, shape index: {}]   ;;  %s3905_s5 = inlined_call_operand.hbm [shape: f32[128,128], index: 5, kind: input, shape index: {}]   ;;  %s3906_s6 = inlined_call_operand.hbm [shape: f32[128,128], index: 6, kind: input, shape index: {}]   ;;  %s3907_s7 = inlined_call_operand.vmem [shape: f32[1,128], index: 7, kind: input, shape index: {}]   ;;  %s3908_s8 = inlined_call_operand.vmem [shape: f32[1,128], index: 8, kind: input, shape index: {}]   ;;  %s3909_s9 = inlined_call_operand.vmem [shape: f32[8,1], index: 9, kind: input, shape index: {}]   ;;  %s3910_s10 = inlined_call_operand.hbm [shape: f32[8,128], index: 10, kind: output, shape index: {0}]   ;;  %s3911_s11 = inlined_call_operand.vmem [shape: f32[8,1], index: 11, kind: output, shape index: {1}]  }
   0x1   :  { %18 = vsyncpa [#allocation6], 0 }
   0x2   :  { %19 = vsyncpa [#allocation4], 0  ;;  %s3183_s17 = smov [#allocation5]   ;;  %s3184_s19 = smov [#allocation2]  }
   0x3   :  { %s45_s18 = sshll.u32 %s3183_s17, 4  ;;  %s27_s20 = sshll.u32 %s3184_s19, 4  ;;  %s46_s18 = int_to_ptr.vmem [resolvable:$true] %s45_s18  ;;  %s3253_s20 = int_to_ptr.vmem [resolvable:$true] %s27_s20 }
   0x4   :  { %s3089_s23 = scalar_lea.hbm %s3905_s5, 2048 }
   0x5   :  { %p3090_p0 = scmp.ne.s32.totalorder %s3905_s5, %s3089_s23  ;;  %p3093_p1 = scmp.lt.u32.totalorder %s3089_s23, %s3905_s5 }
   0x7   :  { %p3095_p2 = pnand %p3093_p1, %p3090_p0 }
   0x9   :  { %3098 = shalt.err (!%p3095_p2)
}
   0xa   :  { %s3099_s28 = scalar_lea.vmem %s46_s18, 2048  ;;  %p3104_p4 = scmp.lt.s32.totalorder %s46_s18, %s46_s18 }
   0xb   :  { %p3100_p3 = scmp.ne.s32.totalorder %s46_s18, %s3099_s28  ;;  %p3105_p5 = scmp.lt.s32.totalorder %s3099_s28, %s3099_s28 }
   0xd   :  { %p3106_p6 = por %p3105_p5, %p3104_p4 }
   0xf   :  { %p3107_p7 = pnand %p3106_p6, %p3100_p3 }
  0x11   :  { %3110 = shalt.err (!%p3107_p7)
}
  0x12   :  { %s3185_s29 = smov 128   ;;  %s3186_s30 = smov 8  }
  0x13   :  { %51 = dma.hbm_to_vmem [thread:$0]  %s3905_s5, 2048, %s46_s18, [#allocation6], %s3185_s29, %s3185_s29, %s3186_s30  }
  0x14   :  { %s3111_s16 = scalar_lea.hbm %s3901_s1, 2048 }
  0x15   :  { %p3112_p8 = scmp.ne.s32.totalorder %s3901_s1, %s3111_s16  ;;  %p3115_p9 = scmp.lt.u32.totalorder %s3111_s16, %s3901_s1 }
  0x17   :  { %p3117_p10 = pnand %p3115_p9, %p3112_p8 }
  0x19   :  { %3120 = shalt.err (!%p3117_p10)
}
  0x1a   :  { %s3121_s23 = scalar_lea.vmem %s3253_s20, 2048  ;;  %p3126_p12 = scmp.lt.s32.totalorder %s3253_s20, %s3253_s20 }
  0x1b   :  { %p3122_p11 = scmp.ne.s32.totalorder %s3253_s20, %s3121_s23  ;;  %p3127_p13 = scmp.lt.s32.totalorder %s3121_s23, %s3121_s23 }
  0x1d   :  { %p3128_p0 = por %p3127_p13, %p3126_p12 }
  0x1f   :  { %p3129_p1 = pnand %p3128_p0, %p3122_p11 }
  0x21   :  { %3132 = shalt.err (!%p3129_p1)
}
  0x22   :  { %33 = dma.hbm_to_vmem [thread:$0]  %s3901_s1, 2048, %s3253_s20, [#allocation3], %s3185_s29, %s3185_s29, %s3186_s30  }
  0x23   :  { %s3187_s24 = smov [#allocation7]   ;;  %s3133_s28 = scalar_lea.hbm %s3906_s6, 2048 }
  0x24   :  { %s57_s25 = sshll.u32 %s3187_s24, 4  ;;  %p3134_p2 = scmp.ne.s32.totalorder %s3906_s6, %s3133_s28  ;;  %s58_s25 = int_to_ptr.vmem [resolvable:$true] %s57_s25 }
  0x25   :  { %p3137_p3 = scmp.lt.u32.totalorder %s3133_s28, %s3906_s6 }
  0x27   :  { %p3139_p4 = pnand %p3137_p3, %p3134_p2 }
  0x29   :  { %3142 = shalt.err (!%p3139_p4)
}
  0x2a   :  { %s3143_s16 = scalar_lea.vmem %s58_s25, 2048  ;;  %p3148_p6 = scmp.lt.s32.totalorder %s58_s25, %s58_s25 }
  0x2b   :  { %p3144_p5 = scmp.ne.s32.totalorder %s58_s25, %s3143_s16  ;;  %p3149_p7 = scmp.lt.s32.totalorder %s3143_s16, %s3143_s16 }
  0x2d   :  { %p3150_p8 = por %p3149_p7, %p3148_p6 }
  0x2f   :  { %p3151_p9 = pnand %p3150_p8, %p3144_p5 }
  0x31   :  { %3154 = shalt.err (!%p3151_p9)
}
  0x32   :  { %63 = dma.hbm_to_vmem [thread:$0]  %s3906_s6, 2048, %s58_s25, [#allocation6], %s3185_s29, %s3185_s29, %s3186_s30  }
  0x33   :  { %3177 = dma.done.wait [#allocation3], 2048  }
  0x34   :  { %3178 = vsyncadd [#allocation3], 4294965248 }
  0x35   :  { %3179 = dma.done.wait [#allocation6], 4096  }
  0x36   :  { %3180 = vsyncadd [#allocation6], 4294963200  ;;  %v3188_v0 = vmov 0   ;;  %v117_v1 = vld [vmem:[%s3909_s9] sm:$0xff]  ;;  %v81_v3 = vld [vmem:[#allocation5 + $0x8] sm:$0xff]  ;;  %v3189_v4 = vmov 0.0|0.0  }
  0x37   :  { %3051 = vset.pattern.permute.xlu0 %v3188_v0  ;;  %v80_v2 = vld [vmem:[#allocation5] sm:$0xff]  ;;  %2657 = vmatprep.subr.bf16.mxu0 %v3189_v4  ;;  %v97_v7 = vld [vmem:[#allocation7 + $0x8] sm:$0xff]  ;;  %v82_v8 = vld [vmem:[#allocation5 + $0x10] sm:$0xff]  ;;  %vm3190_vm0 = vmmov 0   ;;  %v3191_v13 = vmov 0.0   ;;  %vm1777_vm9 = vcmask 7168  }
  0x38   :  { %128 = vperm.xlu0 %3051, %v117_v1   ;;  %v3309_v5 = vpack.c.bf16 %v81_v3, %v80_v2  ;;  %v96_v6 = vld [vmem:[#allocation7] sm:$0xff]  ;;  %2681 = vmatprep.subr.bf16.mxu1 %v3189_v4  ;;  %v83_v10 = vld [vmem:[#allocation5 + $0x18] sm:$0xff]  ;;  %v98_v11 = vld [vmem:[#allocation7 + $0x10] sm:$0xff] }
  0x39   :  { %v3312_v9 = vpack.c.bf16 %v97_v7, %v96_v6  ;;  %v99_v12 = vld [vmem:[#allocation7 + $0x18] sm:$0xff]  ;;  %2129 = vmatprep.mubr.msk.f32.mxu0 %vm3190_vm0, %v3191_v13  ;;  %v3317_v14 = vpack.c.bf16 %v83_v10, %v82_v8  ;;  %2164 = vmatprep.mubr.msk.f32.mxu1 %vm3190_vm0, %v3191_v13  ;;  %v84_v16 = vld [vmem:[#allocation5 + $0x20] sm:$0xff]  ;;  %v85_v17 = vld [vmem:[#allocation5 + $0x28] sm:$0xff] }
  0x3a   :  { %2659 = vmatpush3.bf16.msra.mxu0 %v3309_v5  ;;  %v3323_v15 = vpack.c.bf16 %v99_v12, %v98_v11  ;;  %v100_v18 = vld [vmem:[#allocation7 + $0x20] sm:$0xff]  ;;  %v101_v19 = vld [vmem:[#allocation7 + $0x28] sm:$0xff]  ;;  %v3327_v20 = vpack.c.bf16 %v85_v17, %v84_v16  ;;  %v86_v22 = vld [vmem:[#allocation5 + $0x30] sm:$0xff]  ;;  %v118_v12 = vlaneseq }
  0x3b   :  { %2683 = vmatpush3.bf16.msra.mxu1 %v3312_v9  ;;  %2660 = vmatprep.subr.bf16.mxu0 %v3189_v4  ;;  %v3331_v21 = vpack.c.bf16 %v101_v19, %v100_v18  ;;  %v87_v23 = vld [vmem:[#allocation5 + $0x38] sm:$0xff]  ;;  %v102_v24 = vld [vmem:[#allocation7 + $0x30] sm:$0xff]  ;;  %v88_v28 = vld [vmem:[#allocation5 + $0x40] sm:$0xff] }
  0x3c   :  { %2684 = vmatprep.subr.bf16.mxu1 %v3189_v4  ;;  %v103_v25 = vld [vmem:[#allocation7 + $0x38] sm:$0xff]  ;;  %v3335_v26 = vpack.c.bf16 %v87_v23, %v86_v22  ;;  %v89_v29 = vld [vmem:[#allocation5 + $0x48] sm:$0xff]  ;;  %v104_v30 = vld [vmem:[#allocation7 + $0x40] sm:$0xff]  ;;  %v156_v16 = vshrl.u32 %v118_v12, 7 }
  0x3d   :  { %v3339_v27 = vpack.c.bf16 %v103_v25, %v102_v24  ;;  %v105_v31 = vld [vmem:[#allocation7 + $0x48] sm:$0xff]  ;;  %v3343_v32 = vpack.c.bf16 %v89_v29, %v88_v28  ;;  %v90_v34 = vld [vmem:[#allocation5 + $0x50] sm:$0xff]  ;;  %v91_v35 = vld [vmem:[#allocation5 + $0x58] sm:$0xff] }
  0x3e   :  { %2662 = vmatpush3.bf16.msra.mxu0 %v3317_v14  ;;  %v3347_v33 = vpack.c.bf16 %v105_v31, %v104_v30  ;;  %v106_v36 = vld [vmem:[#allocation7 + $0x50] sm:$0xff]  ;;  %v107_v37 = vld [vmem:[#allocation7 + $0x58] sm:$0xff]  ;;  %v3351_v38 = vpack.c.bf16 %v91_v35, %v90_v34  ;;  %v92_v40 = vld [vmem:[#allocation5 + $0x60] sm:$0xff]  ;;  %v3394_v18 = vsub.s32 0, %v156_v16  ;;  %v3442_v35 = vand.u32 127, %v118_v12 }
  0x3f   :  { %2686 = vmatpush3.bf16.msra.mxu1 %v3323_v15  ;;  %2663 = vmatprep.subr.bf16.mxu0 %v3189_v4  ;;  %v3355_v39 = vpack.c.bf16 %v107_v37, %v106_v36  ;;  %v93_v41 = vld [vmem:[#allocation5 + $0x68] sm:$0xff]  ;;  %v108_v42 = vld [vmem:[#allocation7 + $0x60] sm:$0xff]  ;;  %v94_v46 = vld [vmem:[#allocation5 + $0x70] sm:$0xff] }
  0x40   :  { %2687 = vmatprep.subr.bf16.mxu1 %v3189_v4  ;;  %v109_v43 = vld [vmem:[#allocation7 + $0x68] sm:$0xff]  ;;  %v3359_v44 = vpack.c.bf16 %v93_v41, %v92_v40  ;;  %v95_v47 = vld [vmem:[#allocation5 + $0x78] sm:$0xff]  ;;  %v110_v48 = vld [vmem:[#allocation7 + $0x70] sm:$0xff]  ;;  %vm321_vm1 = vcmp.eq.s32.totalorder %v3442_v35, 0  ;;  %vm526_vm2 = vcmp.eq.s32.totalorder %v3442_v35, 1  ;;  %vm731_vm3 = vcmp.eq.s32.totalorder %v3442_v35, 2 }
  0x41   :  { %v3363_v45 = vpack.c.bf16 %v109_v43, %v108_v42  ;;  %v111_v49 = vld [vmem:[#allocation7 + $0x78] sm:$0xff]  ;;  %v3367_v50 = vpack.c.bf16 %v95_v47, %v94_v46  ;;  %v3381_v52 = vld [vmem:[%s3902_s2] ss:$0 sm:$0xff]  ;;  %v1802_v37 = vsel %vm321_vm1, 1.0, %v3191_v13  ;;  %vm936_vm4 = vcmp.eq.s32.totalorder %v3442_v35, 3 }
  0x42   :  { %2665 = vmatpush3.bf16.msra.mxu0 %v3327_v20  ;;  %v3371_v51 = vpack.c.bf16 %v111_v49, %v110_v48  ;;  %v3392_v17 = vld [vmem:[%s3903_s3] sm:$0x1]  ;;  %vm1141_vm5 = vcmp.eq.s32.totalorder %v3442_v35, 4  ;;  %vm1346_vm6 = vcmp.eq.s32.totalorder %v3442_v35, 5  ;;  %vm1551_vm7 = vcmp.eq.s32.totalorder %v3442_v35, 6 }
  0x43   :  { %2689 = vmatpush3.bf16.msra.mxu1 %v3331_v21  ;;  %2666 = vmatprep.subr.bf16.mxu0 %v3189_v4  ;;  %v3400_v23 = vld [vmem:[%s3904_s4] sm:$0x1]  ;;  %vm1756_vm8 = vcmp.eq.s32.totalorder %v3442_v35, 7 }
  0x44   :  { %2690 = vmatprep.subr.bf16.mxu1 %v3189_v4  ;;  %v3448_v36 = vld [vmem:[%s3900_s0] sm:$0xff] }
  0x45   :  { %v332_v40 = vmul.f32 %v1802_v37, %v3448_v36  ;;  %v3457_v41 = vld [vmem:[%s3907_s7] ss:$0 sm:$0xff] }
  0x46   :  { %2668 = vmatpush3.bf16.msra.mxu0 %v3335_v26  ;;  %v3462_v42 = vld [vmem:[%s3908_s8] ss:$0 sm:$0xff] }
  0x47   :  { %2692 = vmatpush3.bf16.msra.mxu1 %v3339_v27  ;;  %2669 = vmatprep.subr.bf16.mxu0 %v3189_v4 }
  0x48   :  { %2693 = vmatprep.subr.bf16.mxu1 %v3189_v4  ;;  %333 = vadd.xlane.f32.xlu1 %v332_v40 }
  0x4a   :  { %2671 = vmatpush3.bf16.msra.mxu0 %v3343_v32 }
  0x4b   :  { %2695 = vmatpush3.bf16.msra.mxu1 %v3347_v33  ;;  %2672 = vmatprep.subr.bf16.mxu0 %v3189_v4 }
  0x4c   :  { %2696 = vmatprep.subr.bf16.mxu1 %v3189_v4 }
  0x4e   :  { %2674 = vmatpush3.bf16.msra.mxu0 %v3351_v38 }
  0x4f   :  { %2698 = vmatpush3.bf16.msra.mxu1 %v3355_v39  ;;  %2675 = vmatprep.subr.bf16.mxu0 %v3189_v4 }
  0x50   :  { %2699 = vmatprep.subr.bf16.mxu1 %v3189_v4 }
  0x52   :  { %2677 = vmatpush3.bf16.msra.mxu0 %v3359_v44 }
  0x53   :  { %2701 = vmatpush3.bf16.msra.mxu1 %v3363_v45  ;;  %2678 = vmatprep.subr.bf16.mxu0 %v3189_v4 }
  0x54   :  { %2702 = vmatprep.subr.bf16.mxu1 %v3189_v4 }
  0x56   :  { %2680 = vmatpush3.bf16.msra.mxu0 %v3367_v50 }
  0x57   :  { %2704 = vmatpush3.bf16.msra.mxu1 %v3371_v51  ;;  %2705 = vmatprep.subr.bf16.mxu0 %v3189_v4 }
  0x58   :  { %2729 = vmatprep.subr.bf16.mxu1 %v3189_v4 }
  0xb7   :  { %v3383_v53 = vpop.permute.xlu0 %128 }
  0xb8   :  { %v131_v54 = vmul.f32 %v3381_v52, %v3383_v53 }
  0xba   :  { %v132_v55 = vrot.slane %v131_v54, 4 }
  0xbc   :  { %v133_v56 = vadd.f32 %v132_v55, %v131_v54 }
  0xbe   :  { %v134_v57 = vrot.slane %v133_v56, 2 }
  0xc0   :  { %v135_v58 = vadd.f32 %v134_v57, %v133_v56 }
  0xc2   :  { %v136_v59 = vrot.slane %v135_v58, 1 }
  0xc4   :  { %v137_v60 = vadd.f32 %v136_v59, %v135_v58 }
  0xc6   :  { %v138_v61 = vmul.f32 0.25, %v137_v60 }
  0xc8   :  { %v139_v62 = vsub.f32 %v3381_v52, %v138_v61 }
  0xca   :  { %v140_v63 = vmul.f32 %v139_v62, %v139_v62 }
  0xcc   :  { %v141_v0 = vmul.f32 %v140_v63, %v3383_v53  ;;  %v1804_v63 = vld [vmem:[#allocation2] ss:$0 sm:$0xff] }
  0xce   :  { %v142_v1 = vrot.slane %v141_v0, 4 }
  0xd0   :  { %v143_v2 = vadd.f32 %v142_v1, %v141_v0 }
  0xd2   :  { %v144_v3 = vrot.slane %v143_v2, 2 }
  0xd4   :  { %v145_v6 = vadd.f32 %v144_v3, %v143_v2 }
  0xd5   :  { %v334_v60 = vpop.xlane.xlu1 %333 }
  0xd6   :  { %v146_v7 = vrot.slane %v145_v6, 1 }
  0xd8   :  { %v147_v8 = vadd.f32 %v146_v7, %v145_v6 }
  0xda   :  { %v148_v10 = vmul.f32 0.25, %v147_v8 }
  0xdc   :  { %v149_v11 = vadd.f32 1e-05, %v148_v10 }
  0xde   :  { %3052 = vrsqrt.f32 %v149_v11 }
  0xe8   :  { %v3053_v19 = vpop.eup %3052 }
  0xe9   :  { %v151_v22 = vmul.f32 %v3053_v19, %v3392_v17 }
  0xeb   :  { %v152_v24 = vmul.f32 %v151_v22, %v138_v61  ;;  %v158_v25 = vrot.slane %v151_v22, %v3394_v18 }
  0xed   :  { %v153_v28 = vsub.f32 %v3400_v23, %v152_v24  ;;  %v160_v29 = vmul.f32 %v3381_v52, %v158_v25 }
  0xef   :  { %v165_v30 = vrot.slane %v153_v28, %v3394_v18 }
  0xf1   :  { %v167_v31 = vadd.f32 %v165_v30, %v160_v29 }
  0xf3   :  { %v168_v34 = vmax.f32 %v167_v31, 0.0 }
  0xf5   :  { %2130 = vmatmul.mubr.f32.vlgmr.msra.gmra.mrb[0].mxu0 %v168_v34  ;;  %2165 = vmatmul.mubr.f32.vlgmr.msra.gmra.mrb[0].mxu1 %v168_v34 }
  0xf6   :  { %2707 = vmatpush3.bf16.msra.mxu0 %v3309_v5  ;;  %2731 = vmatpush3.bf16.msra.mxu1 %v3312_v9 }
  0xf7   :  { %2708 = vmatprep.subr.bf16.mxu0 %v3189_v4  ;;  %2732 = vmatprep.subr.bf16.mxu1 %v3189_v4 }
  0xf8   :  { %2199 = vmatprep.mubr.msk.f32.mxu0 %vm3190_vm0, %v3191_v13  ;;  %2234 = vmatprep.mubr.msk.f32.mxu1 %vm3190_vm0, %v3191_v13 }
  0xfa   :  { %2710 = vmatpush3.bf16.msra.mxu0 %v3317_v14  ;;  %2734 = vmatpush3.bf16.msra.mxu1 %v3323_v15 }
  0xfb   :  { %2711 = vmatprep.subr.bf16.mxu0 %v3189_v4  ;;  %2735 = vmatprep.subr.bf16.mxu1 %v3189_v4 }
  0xfe   :  { %2713 = vmatpush3.bf16.msra.mxu0 %v3327_v20  ;;  %2737 = vmatpush3.bf16.msra.mxu1 %v3331_v21 }
  0xff   :  { %2714 = vmatprep.subr.bf16.mxu0 %v3189_v4  ;;  %2738 = vmatprep.subr.bf16.mxu1 %v3189_v4 }
 0x102   :  { %2716 = vmatpush3.bf16.msra.mxu0 %v3335_v26  ;;  %2740 = vmatpush3.bf16.msra.mxu1 %v3339_v27 }
 0x103   :  { %2717 = vmatprep.subr.bf16.mxu0 %v3189_v4  ;;  %2741 = vmatprep.subr.bf16.mxu1 %v3189_v4 }
 0x106   :  { %2719 = vmatpush3.bf16.msra.mxu0 %v3343_v32  ;;  %2743 = vmatpush3.bf16.msra.mxu1 %v3347_v33 }
 0x107   :  { %2720 = vmatprep.subr.bf16.mxu0 %v3189_v4  ;;  %2744 = vmatprep.subr.bf16.mxu1 %v3189_v4 }
 0x10a   :  { %2722 = vmatpush3.bf16.msra.mxu0 %v3351_v38  ;;  %2746 = vmatpush3.bf16.msra.mxu1 %v3355_v39 }
 0x10b   :  { %2723 = vmatprep.subr.bf16.mxu0 %v3189_v4  ;;  %2747 = vmatprep.subr.bf16.mxu1 %v3189_v4 }
 0x10e   :  { %2725 = vmatpush3.bf16.msra.mxu0 %v3359_v44  ;;  %2749 = vmatpush3.bf16.msra.mxu1 %v3363_v45 }
 0x10f   :  { %2726 = vmatprep.subr.bf16.mxu0 %v3189_v4  ;;  %2750 = vmatprep.subr.bf16.mxu1 %v3189_v4 }
 0x112   :  { %2728 = vmatpush3.bf16.msra.mxu0 %v3367_v50  ;;  %2752 = vmatpush3.bf16.msra.mxu1 %v3371_v51 }
 0x113   :  { %2753 = vmatprep.subr.bf16.mxu0 %v3189_v4  ;;  %2777 = vmatprep.subr.bf16.mxu1 %v3189_v4 }
 0x1c8   :  { %v241_v43 = vpop.f32.mrb[0].mxu0  ;;  %v317_v46 = vpop.f32.mrb[0].mxu1 }
 0x1c9   :  { %v242_v47 = vadd.f32 %v3457_v41, %v241_v43  ;;  %v318_v48 = vadd.f32 %v3462_v42, %v317_v46  ;;  %v2131_v49 = vpop.f32.mrb[1].mxu0  ;;  %v2166_v54 = vpop.f32.mrb[1].mxu1 }
 0x1cb   :  { %v327_v55 = vmul.f32 %v1802_v37, %v318_v48  ;;  %v324_v56 = vmul.f32 %v1802_v37, %v242_v47 }
 0x1cd   :  { %328 = vadd.xlane.f32.xlu0 %v327_v55  ;;  %325 = vadd.xlane.f32.xlu1 %v324_v56 }
 0x25a   :  { %v3466_v57 = vpop.xlane.xlu0 %328  ;;  %v326_v0 = vpop.xlane.xlu1 %325 }
 0x25b   :  { %v1803_v58 = vclamps-f32 %v3466_v57, 10.0 }
 0x25d   :  { %v335_v59 = vmul.f32 1.442695, %v1803_v58 }
 0x25f   :  { %3054 = vpow2.f32 %v335_v59 }
 0x269   :  { %v3055_v61 = vpop.eup %3054 }
 0x26a   :  { %v337_v62 = vmul.f32 %v3055_v61, %v334_v60 }
 0x26c   :  { %v3471_v1 = vadd.f32 %v337_v62, %v326_v0  ;;  %v1805_v62 = vsel %vm526_vm2, 1.0, %v3191_v13 }
 0x26e   :  { %v346_v2 = vmul.f32 %v1804_v63, %v3471_v1 }
 0x270   :  { %v3475_v3 = vadd.f32 %v3381_v52, %v346_v2 }
 0x272   :  { %v348_v6 = vmul.f32 %v3475_v3, %v3383_v53 }
 0x274   :  { %v349_v7 = vrot.slane %v348_v6, 4 }
 0x276   :  { %v350_v8 = vadd.f32 %v349_v7, %v348_v6  ;;  %v537_v7 = vmul.f32 %v1805_v62, %v3448_v36 }
 0x278   :  { %v351_v10 = vrot.slane %v350_v8, 2 }
 0x27a   :  { %v352_v11 = vadd.f32 %v351_v10, %v350_v8 }
 0x27c   :  { %v353_v12 = vrot.slane %v352_v11, 1 }
 0x27e   :  { %v354_v16 = vadd.f32 %v353_v12, %v352_v11 }
 0x280   :  { %v355_v19 = vmul.f32 0.25, %v354_v16 }
 0x282   :  { %v356_v22 = vsub.f32 %v3475_v3, %v355_v19 }
 0x284   :  { %v357_v24 = vmul.f32 %v356_v22, %v356_v22 }
 0x286   :  { %v358_v25 = vmul.f32 %v357_v24, %v3383_v53 }
 0x288   :  { %v359_v28 = vrot.slane %v358_v25, 4 }
 0x28a   :  { %v360_v29 = vadd.f32 %v359_v28, %v358_v25  ;;  %v1807_v25 = vld [vmem:[#allocation2 + $0x1] ss:$0 sm:$0xff] }
 0x28c   :  { %v361_v30 = vrot.slane %v360_v29, 2 }
 0x28e   :  { %v362_v52 = vadd.f32 %v361_v30, %v360_v29  ;;  %v339_v30 = vsel %vm321_vm1, %v3471_v1, 0.0 }
 0x290   :  { %v363_v31 = vrot.slane %v362_v52, 1 }
 0x292   :  { %v364_v34 = vadd.f32 %v363_v31, %v362_v52 }
 0x294   :  { %v365_v37 = vmul.f32 0.25, %v364_v34 }
 0x296   :  { %v366_v40 = vadd.f32 1e-05, %v365_v37 }
 0x298   :  { %3056 = vrsqrt.f32 %v366_v40 }
 0x2a2   :  { %v3057_v43 = vpop.eup %3056 }
 0x2a3   :  { %v368_v46 = vmul.f32 %v3057_v43, %v3392_v17 }
 0x2a5   :  { %v369_v47 = vmul.f32 %v368_v46, %v355_v19  ;;  %v375_v48 = vrot.slane %v368_v46, %v3394_v18 }
 0x2a7   :  { %v370_v49 = vsub.f32 %v3400_v23, %v369_v47  ;;  %v377_v54 = vmul.f32 %v375_v48, %v3475_v3 }
 0x2a9   :  { %v382_v55 = vrot.slane %v370_v49, %v3394_v18 }
 0x2ab   :  { %v384_v56 = vadd.f32 %v382_v55, %v377_v54 }
 0x2ad   :  { %v385_v59 = vmax.f32 %v384_v56, 0.0 }
 0x2af   :  { %2200 = vmatmul.mubr.f32.vlgmr.msra.gmra.mrb[2].mxu0 %v385_v59  ;;  %2235 = vmatmul.mubr.f32.vlgmr.msra.gmra.mrb[2].mxu1 %v385_v59 }
 0x2b0   :  { %2755 = vmatpush3.bf16.msra.mxu0 %v3309_v5  ;;  %2779 = vmatpush3.bf16.msra.mxu1 %v3312_v9 }
 0x2b1   :  { %2756 = vmatprep.subr.bf16.mxu0 %v3189_v4  ;;  %2780 = vmatprep.subr.bf16.mxu1 %v3189_v4 }
 0x2b2   :  { %2269 = vmatprep.mubr.msk.f32.mxu0 %vm3190_vm0, %v3191_v13  ;;  %2304 = vmatprep.mubr.msk.f32.mxu1 %vm3190_vm0, %v3191_v13 }
 0x2b4   :  { %2758 = vmatpush3.bf16.msra.mxu0 %v3317_v14  ;;  %2782 = vmatpush3.bf16.msra.mxu1 %v3323_v15 }
 0x2b5   :  { %2759 = vmatprep.subr.bf16.mxu0 %v3189_v4  ;;  %2783 = vmatprep.subr.bf16.mxu1 %v3189_v4 }
 0x2b8   :  { %2761 = vmatpush3.bf16.msra.mxu0 %v3327_v20  ;;  %2785 = vmatpush3.bf16.msra.mxu1 %v3331_v21 }
 0x2b9   :  { %2762 = vmatprep.subr.bf16.mxu0 %v3189_v4  ;;  %2786 = vmatprep.subr.bf16.mxu1 %v3189_v4 }
 0x2bc   :  { %2764 = vmatpush3.bf16.msra.mxu0 %v3335_v26  ;;  %2788 = vmatpush3.bf16.msra.mxu1 %v3339_v27 }
 0x2bd   :  { %2765 = vmatprep.subr.bf16.mxu0 %v3189_v4  ;;  %2789 = vmatprep.subr.bf16.mxu1 %v3189_v4 }
 0x2c0   :  { %2767 = vmatpush3.bf16.msra.mxu0 %v3343_v32  ;;  %2791 = vmatpush3.bf16.msra.mxu1 %v3347_v33 }
 0x2c1   :  { %2768 = vmatprep.subr.bf16.mxu0 %v3189_v4  ;;  %2792 = vmatprep.subr.bf16.mxu1 %v3189_v4 }
 0x2c4   :  { %2770 = vmatpush3.bf16.msra.mxu0 %v3351_v38  ;;  %2794 = vmatpush3.bf16.msra.mxu1 %v3355_v39 }
 0x2c5   :  { %2771 = vmatprep.subr.bf16.mxu0 %v3189_v4  ;;  %2795 = vmatprep.subr.bf16.mxu1 %v3189_v4 }
 0x2c8   :  { %2773 = vmatpush3.bf16.msra.mxu0 %v3359_v44  ;;  %2797 = vmatpush3.bf16.msra.mxu1 %v3363_v45 }
 0x2c9   :  { %2774 = vmatprep.subr.bf16.mxu0 %v3189_v4  ;;  %2798 = vmatprep.subr.bf16.mxu1 %v3189_v4 }
 0x2cc   :  { %2776 = vmatpush3.bf16.msra.mxu0 %v3367_v50  ;;  %2800 = vmatpush3.bf16.msra.mxu1 %v3371_v51 }
 0x2cd   :  { %2801 = vmatprep.subr.bf16.mxu0 %v3189_v4  ;;  %2825 = vmatprep.subr.bf16.mxu1 %v3189_v4 }
 0x382   :  { %v452_v60 = vpop.f32.mrb[2].mxu0  ;;  %v522_v61 = vpop.f32.mrb[2].mxu1 }
 0x383   :  { %v523_v63 = vadd.f32 %v3462_v42, %v522_v61  ;;  %v2201_v0 = vpop.f32.mrb[3].mxu0  ;;  %v2236_v2 = vpop.f32.mrb[3].mxu1  ;;  %v453_v8 = vadd.f32 %v3457_v41, %v452_v60 }
 0x385   :  { %v532_v6 = vmul.f32 %v1805_v62, %v523_v63  ;;  %v529_v10 = vmul.f32 %v1805_v62, %v453_v8 }
 0x387   :  { %533 = vadd.xlane.f32.xlu1 %v532_v6 }
 0x38b   :  { %538 = vadd.xlane.f32.xlu1 %v537_v7 }
 0x38f   :  { %530 = vadd.xlane.f32.xlu1 %v529_v10 }
 0x414   :  { %v3529_v11 = vpop.xlane.xlu1 %533 }
 0x415   :  { %v1806_v12 = vclamps-f32 %v3529_v11, 10.0 }
 0x417   :  { %v540_v16 = vmul.f32 1.442695, %v1806_v12 }
 0x418   :  { %v539_v19 = vpop.xlane.xlu1 %538 }
 0x419   :  { %3058 = vpow2.f32 %v540_v16 }
 0x41c   :  { %v531_v28 = vpop.xlane.xlu1 %530 }
 0x423   :  { %v3059_v22 = vpop.eup %3058 }
 0x424   :  { %v542_v24 = vmul.f32 %v3059_v22, %v539_v19 }
 0x426   :  { %v543_v29 = vadd.f32 %v542_v24, %v531_v28 }
 0x428   :  { %v3539_v52 = vsel %vm526_vm2, %v543_v29, %v339_v30  ;;  %v551_v31 = vmul.f32 %v1807_v25, %v543_v29  ;;  %v1808_v30 = vsel %vm731_vm3, 1.0, %v3191_v13 }
 0x42a   :  { %v3542_v34 = vadd.f32 %v551_v31, %v3475_v3 }
 0x42c   :  { %v553_v37 = vmul.f32 %v3542_v34, %v3383_v53 }
 0x42e   :  { %v554_v40 = vrot.slane %v553_v37, 4 }
 0x430   :  { %v555_v43 = vadd.f32 %v554_v40, %v553_v37 }
 0x432   :  { %v556_v46 = vrot.slane %v555_v43, 2 }
 0x434   :  { %v557_v47 = vadd.f32 %v556_v46, %v555_v43  ;;  %v742_v46 = vmul.f32 %v1808_v30, %v3448_v36 }
 0x436   :  { %v558_v48 = vrot.slane %v557_v47, 1 }
 0x438   :  { %v559_v49 = vadd.f32 %v558_v48, %v557_v47 }
 0x43a   :  { %v560_v54 = vmul.f32 0.25, %v559_v49 }
 0x43c   :  { %v561_v1 = vsub.f32 %v3542_v34, %v560_v54 }
 0x43e   :  { %v562_v55 = vmul.f32 %v561_v1, %v561_v1 }
 0x440   :  { %v563_v56 = vmul.f32 %v562_v55, %v3383_v53 }
 0x442   :  { %v564_v59 = vrot.slane %v563_v56, 4 }
 0x444   :  { %v565_v60 = vadd.f32 %v564_v59, %v563_v56 }
 0x446   :  { %v566_v61 = vrot.slane %v565_v60, 2 }
 0x448   :  { %v567_v3 = vadd.f32 %v566_v61, %v565_v60 }
 0x44a   :  { %v568_v62 = vrot.slane %v567_v3, 1 }
 0x44c   :  { %v569_v63 = vadd.f32 %v568_v62, %v567_v3  ;;  %v1810_v3 = vld [vmem:[#allocation2 + $0x2] ss:$0 sm:$0xff] }
 0x44e   :  { %v570_v0 = vmul.f32 0.25, %v569_v63 }
 0x450   :  { %v571_v2 = vadd.f32 1e-05, %v570_v0 }
 0x452   :  { %3060 = vrsqrt.f32 %v571_v2 }
 0x45c   :  { %v3061_v6 = vpop.eup %3060 }
 0x45d   :  { %v573_v7 = vmul.f32 %v3061_v6, %v3392_v17 }
 0x45f   :  { %v574_v8 = vmul.f32 %v573_v7, %v560_v54  ;;  %v580_v10 = vrot.slane %v573_v7, %v3394_v18  ;;  %v545_v54 = vadd.f32 %v1806_v12, %v1803_v58 }
 0x461   :  { %v575_v16 = vsub.f32 %v3400_v23, %v574_v8  ;;  %v582_v19 = vmul.f32 %v580_v10, %v3542_v34 }
 0x463   :  { %v587_v22 = vrot.slane %v575_v16, %v3394_v18 }
 0x465   :  { %v589_v24 = vadd.f32 %v587_v22, %v582_v19 }
 0x467   :  { %v590_v25 = vmax.f32 %v589_v24, 0.0 }
 0x469   :  { %2270 = vmatmul.mubr.f32.vlgmr.msra.gmra.mrb[4].mxu0 %v590_v25  ;;  %2305 = vmatmul.mubr.f32.vlgmr.msra.gmra.mrb[4].mxu1 %v590_v25 }
 0x46a   :  { %2803 = vmatpush3.bf16.msra.mxu0 %v3309_v5  ;;  %2827 = vmatpush3.bf16.msra.mxu1 %v3312_v9 }
 0x46b   :  { %2804 = vmatprep.subr.bf16.mxu0 %v3189_v4  ;;  %2828 = vmatprep.subr.bf16.mxu1 %v3189_v4 }
 0x46c   :  { %2339 = vmatprep.mubr.msk.f32.mxu0 %vm3190_vm0, %v3191_v13  ;;  %2374 = vmatprep.mubr.msk.f32.mxu1 %vm3190_vm0, %v3191_v13 }
 0x46e   :  { %2806 = vmatpush3.bf16.msra.mxu0 %v3317_v14  ;;  %2830 = vmatpush3.bf16.msra.mxu1 %v3323_v15 }
 0x46f   :  { %2807 = vmatprep.subr.bf16.mxu0 %v3189_v4  ;;  %2831 = vmatprep.subr.bf16.mxu1 %v3189_v4 }
 0x472   :  { %2809 = vmatpush3.bf16.msra.mxu0 %v3327_v20  ;;  %2833 = vmatpush3.bf16.msra.mxu1 %v3331_v21 }
 0x473   :  { %2810 = vmatprep.subr.bf16.mxu0 %v3189_v4  ;;  %2834 = vmatprep.subr.bf16.mxu1 %v3189_v4 }
 0x476   :  { %2812 = vmatpush3.bf16.msra.mxu0 %v3335_v26  ;;  %2836 = vmatpush3.bf16.msra.mxu1 %v3339_v27 }
 0x477   :  { %2813 = vmatprep.subr.bf16.mxu0 %v3189_v4  ;;  %2837 = vmatprep.subr.bf16.mxu1 %v3189_v4 }
 0x47a   :  { %2815 = vmatpush3.bf16.msra.mxu0 %v3343_v32  ;;  %2839 = vmatpush3.bf16.msra.mxu1 %v3347_v33 }
 0x47b   :  { %2816 = vmatprep.subr.bf16.mxu0 %v3189_v4  ;;  %2840 = vmatprep.subr.bf16.mxu1 %v3189_v4 }
 0x47e   :  { %2818 = vmatpush3.bf16.msra.mxu0 %v3351_v38  ;;  %2842 = vmatpush3.bf16.msra.mxu1 %v3355_v39 }
 0x47f   :  { %2819 = vmatprep.subr.bf16.mxu0 %v3189_v4  ;;  %2843 = vmatprep.subr.bf16.mxu1 %v3189_v4 }
 0x482   :  { %2821 = vmatpush3.bf16.msra.mxu0 %v3359_v44  ;;  %2845 = vmatpush3.bf16.msra.mxu1 %v3363_v45 }
 0x483   :  { %2822 = vmatprep.subr.bf16.mxu0 %v3189_v4  ;;  %2846 = vmatprep.subr.bf16.mxu1 %v3189_v4 }
 0x486   :  { %2824 = vmatpush3.bf16.msra.mxu0 %v3367_v50  ;;  %2848 = vmatpush3.bf16.msra.mxu1 %v3371_v51 }
 0x487   :  { %2849 = vmatprep.subr.bf16.mxu0 %v3189_v4  ;;  %2873 = vmatprep.subr.bf16.mxu1 %v3189_v4 }
 0x53c   :  { %v657_v28 = vpop.f32.mrb[4].mxu0  ;;  %v727_v29 = vpop.f32.mrb[4].mxu1 }
 0x53d   :  { %v728_v31 = vadd.f32 %v3462_v42, %v727_v29  ;;  %v2271_v37 = vpop.f32.mrb[5].mxu0  ;;  %v2306_v40 = vpop.f32.mrb[5].mxu1  ;;  %v658_v47 = vadd.f32 %v3457_v41, %v657_v28 }
 0x53f   :  { %v737_v43 = vmul.f32 %v1808_v30, %v728_v31  ;;  %v734_v48 = vmul.f32 %v1808_v30, %v658_v47 }
 0x541   :  { %738 = vadd.xlane.f32.xlu1 %v737_v43 }
 0x545   :  { %743 = vadd.xlane.f32.xlu1 %v742_v46 }
 0x549   :  { %735 = vadd.xlane.f32.xlu1 %v734_v48 }
 0x5ce   :  { %v739_v49 = vpop.xlane.xlu1 %738 }
 0x5cf   :  { %v1809_v1 = vclamps-f32 %v739_v49, 10.0 }
 0x5d1   :  { %v745_v55 = vmul.f32 1.442695, %v1809_v1  ;;  %v3600_v56 = vadd.f32 %v1809_v1, %v545_v54 }
 0x5d2   :  { %v744_v59 = vpop.xlane.xlu1 %743 }
 0x5d3   :  { %3062 = vpow2.f32 %v745_v55 }
 0x5d6   :  { %v736_v62 = vpop.xlane.xlu1 %735 }
 0x5dd   :  { %v3063_v60 = vpop.eup %3062 }
 0x5de   :  { %v747_v61 = vmul.f32 %v3063_v60, %v744_v59  ;;  %v1811_v59 = vsel %vm936_vm4, 1.0, %v3191_v13 }
 0x5df   :  { %v947_v60 = vmul.f32 %v1811_v59, %v3448_v36 }
 0x5e0   :  { %v748_v63 = vadd.f32 %v747_v61, %v736_v62 }
 0x5e1   :  { %948 = vadd.xlane.f32.xlu0 %v947_v60 }
 0x5e2   :  { %v3605_v0 = vsel %vm731_vm3, %v748_v63, %v3539_v52  ;;  %v756_v57 = vmul.f32 %v1810_v3, %v748_v63 }
 0x5e4   :  { %v3608_v11 = vadd.f32 %v756_v57, %v3542_v34 }
 0x5e6   :  { %v758_v58 = vmul.f32 %v3608_v11, %v3383_v53 }
 0x5e8   :  { %v759_v12 = vrot.slane %v758_v58, 4 }
 0x5ea   :  { %v760_v2 = vadd.f32 %v759_v12, %v758_v58 }
 0x5ec   :  { %v761_v6 = vrot.slane %v760_v2, 2 }
 0x5ee   :  { %v762_v7 = vadd.f32 %v761_v6, %v760_v2 }
 0x5f0   :  { %v763_v8 = vrot.slane %v762_v7, 1 }
 0x5f2   :  { %v764_v10 = vadd.f32 %v763_v8, %v762_v7 }
 0x5f4   :  { %v765_v16 = vmul.f32 0.25, %v764_v10 }
 0x5f6   :  { %v766_v19 = vsub.f32 %v3608_v11, %v765_v16 }
 0x5f8   :  { %v767_v22 = vmul.f32 %v766_v19, %v766_v19 }
 0x5fa   :  { %v768_v52 = vmul.f32 %v767_v22, %v3383_v53 }
 0x5fc   :  { %v769_v24 = vrot.slane %v768_v52, 4 }
 0x5fe   :  { %v770_v25 = vadd.f32 %v769_v24, %v768_v52  ;;  %v1813_v24 = vld [vmem:[#allocation2 + $0x3] ss:$0 sm:$0xff] }
 0x600   :  { %v771_v28 = vrot.slane %v770_v25, 2 }
 0x602   :  { %v772_v34 = vadd.f32 %v771_v28, %v770_v25 }
 0x604   :  { %v773_v29 = vrot.slane %v772_v34, 1 }
 0x606   :  { %v774_v30 = vadd.f32 %v773_v29, %v772_v34 }
 0x608   :  { %v775_v31 = vmul.f32 0.25, %v774_v30 }
 0x60a   :  { %v776_v37 = vadd.f32 1e-05, %v775_v31 }
 0x60c   :  { %3064 = vrsqrt.f32 %v776_v37 }
 0x616   :  { %v3065_v40 = vpop.eup %3064 }
 0x617   :  { %v778_v43 = vmul.f32 %v3065_v40, %v3392_v17 }
 0x619   :  { %v779_v46 = vmul.f32 %v778_v43, %v765_v16  ;;  %v785_v47 = vrot.slane %v778_v43, %v3394_v18 }
 0x61b   :  { %v780_v48 = vsub.f32 %v3400_v23, %v779_v46  ;;  %v787_v49 = vmul.f32 %v785_v47, %v3608_v11 }
 0x61d   :  { %v792_v54 = vrot.slane %v780_v48, %v3394_v18 }
 0x61f   :  { %v794_v1 = vadd.f32 %v792_v54, %v787_v49 }
 0x621   :  { %v795_v55 = vmax.f32 %v794_v1, 0.0 }
 0x623   :  { %2340 = vmatmul.mubr.f32.vlgmr.msra.gmra.mrb[6].mxu0 %v795_v55  ;;  %2375 = vmatmul.mubr.f32.vlgmr.msra.gmra.mrb[6].mxu1 %v795_v55 }
 0x624   :  { %2851 = vmatpush3.bf16.msra.mxu0 %v3309_v5  ;;  %2875 = vmatpush3.bf16.msra.mxu1 %v3312_v9 }
 0x625   :  { %2852 = vmatprep.subr.bf16.mxu0 %v3189_v4  ;;  %2876 = vmatprep.subr.bf16.mxu1 %v3189_v4 }
 0x626   :  { %2409 = vmatprep.mubr.msk.f32.mxu0 %vm3190_vm0, %v3191_v13  ;;  %2444 = vmatprep.mubr.msk.f32.mxu1 %vm3190_vm0, %v3191_v13 }
 0x628   :  { %2854 = vmatpush3.bf16.msra.mxu0 %v3317_v14  ;;  %2878 = vmatpush3.bf16.msra.mxu1 %v3323_v15 }
 0x629   :  { %2855 = vmatprep.subr.bf16.mxu0 %v3189_v4  ;;  %2879 = vmatprep.subr.bf16.mxu1 %v3189_v4 }
 0x62c   :  { %2857 = vmatpush3.bf16.msra.mxu0 %v3327_v20  ;;  %2881 = vmatpush3.bf16.msra.mxu1 %v3331_v21 }
 0x62d   :  { %2858 = vmatprep.subr.bf16.mxu0 %v3189_v4  ;;  %2882 = vmatprep.subr.bf16.mxu1 %v3189_v4 }
 0x630   :  { %2860 = vmatpush3.bf16.msra.mxu0 %v3335_v26  ;;  %2884 = vmatpush3.bf16.msra.mxu1 %v3339_v27 }
 0x631   :  { %2861 = vmatprep.subr.bf16.mxu0 %v3189_v4  ;;  %2885 = vmatprep.subr.bf16.mxu1 %v3189_v4 }
 0x634   :  { %2863 = vmatpush3.bf16.msra.mxu0 %v3343_v32  ;;  %2887 = vmatpush3.bf16.msra.mxu1 %v3347_v33 }
 0x635   :  { %2864 = vmatprep.subr.bf16.mxu0 %v3189_v4  ;;  %2888 = vmatprep.subr.bf16.mxu1 %v3189_v4 }
 0x638   :  { %2866 = vmatpush3.bf16.msra.mxu0 %v3351_v38  ;;  %2890 = vmatpush3.bf16.msra.mxu1 %v3355_v39 }
 0x639   :  { %2867 = vmatprep.subr.bf16.mxu0 %v3189_v4  ;;  %2891 = vmatprep.subr.bf16.mxu1 %v3189_v4 }
 0x63c   :  { %2869 = vmatpush3.bf16.msra.mxu0 %v3359_v44  ;;  %2893 = vmatpush3.bf16.msra.mxu1 %v3363_v45 }
 0x63d   :  { %2870 = vmatprep.subr.bf16.mxu0 %v3189_v4  ;;  %2894 = vmatprep.subr.bf16.mxu1 %v3189_v4 }
 0x640   :  { %2872 = vmatpush3.bf16.msra.mxu0 %v3367_v50  ;;  %2896 = vmatpush3.bf16.msra.mxu1 %v3371_v51 }
 0x641   :  { %2897 = vmatprep.subr.bf16.mxu0 %v3189_v4  ;;  %2921 = vmatprep.subr.bf16.mxu1 %v3189_v4 }
 0x66e   :  { %v949_v16 = vpop.xlane.xlu0 %948 }
 0x6f6   :  { %v862_v61 = vpop.f32.mrb[6].mxu0  ;;  %v932_v3 = vpop.f32.mrb[6].mxu1 }
 0x6f7   :  { %v933_v62 = vadd.f32 %v3462_v42, %v932_v3  ;;  %v2341_v63 = vpop.f32.mrb[7].mxu0  ;;  %v2376_v57 = vpop.f32.mrb[7].mxu1  ;;  %v863_v58 = vadd.f32 %v3457_v41, %v862_v61 }
 0x6f9   :  { %v942_v12 = vmul.f32 %v1811_v59, %v933_v62  ;;  %v939_v2 = vmul.f32 %v1811_v59, %v863_v58 }
 0x6fb   :  { %943 = vadd.xlane.f32.xlu1 %v942_v12 }
 0x6ff   :  { %940 = vadd.xlane.f32.xlu1 %v939_v2 }
 0x788   :  { %v944_v6 = vpop.xlane.xlu1 %943 }
 0x789   :  { %v1812_v7 = vclamps-f32 %v944_v6, 10.0 }
 0x78b   :  { %v950_v8 = vmul.f32 1.442695, %v1812_v7  ;;  %v3663_v10 = vadd.f32 %v1812_v7, %v3600_v56 }
 0x78c   :  { %v941_v52 = vpop.xlane.xlu1 %940 }
 0x78d   :  { %3066 = vpow2.f32 %v950_v8 }
 0x797   :  { %v3067_v19 = vpop.eup %3066 }
 0x798   :  { %v952_v22 = vmul.f32 %v3067_v19, %v949_v16  ;;  %v1814_v16 = vsel %vm1141_vm5, 1.0, %v3191_v13 }
 0x799   :  { %v1152_v19 = vmul.f32 %v1814_v16, %v3448_v36 }
 0x79a   :  { %v953_v25 = vadd.f32 %v952_v22, %v941_v52 }
 0x79b   :  { %1153 = vadd.xlane.f32.xlu1 %v1152_v19 }
 0x79c   :  { %v3668_v28 = vsel %vm936_vm4, %v953_v25, %v3605_v0  ;;  %v961_v34 = vmul.f32 %v1813_v24, %v953_v25 }
 0x79e   :  { %v3671_v29 = vadd.f32 %v961_v34, %v3608_v11 }
 0x7a0   :  { %v963_v56 = vmul.f32 %v3671_v29, %v3383_v53 }
 0x7a2   :  { %v964_v30 = vrot.slane %v963_v56, 4 }
 0x7a4   :  { %v965_v31 = vadd.f32 %v964_v30, %v963_v56 }
 0x7a6   :  { %v966_v37 = vrot.slane %v965_v31, 2 }
 0x7a8   :  { %v967_v40 = vadd.f32 %v966_v37, %v965_v31 }
 0x7aa   :  { %v968_v43 = vrot.slane %v967_v40, 1 }
 0x7ac   :  { %v969_v46 = vadd.f32 %v968_v43, %v967_v40 }
 0x7ae   :  { %v970_v47 = vmul.f32 0.25, %v969_v46 }
 0x7b0   :  { %v971_v48 = vsub.f32 %v3671_v29, %v970_v47 }
 0x7b2   :  { %v972_v49 = vmul.f32 %v971_v48, %v971_v48 }
 0x7b4   :  { %v973_v0 = vmul.f32 %v972_v49, %v3383_v53 }
 0x7b6   :  { %v974_v54 = vrot.slane %v973_v0, 4 }
 0x7b8   :  { %v975_v1 = vadd.f32 %v974_v54, %v973_v0  ;;  %v1816_v54 = vld [vmem:[#allocation2 + $0x4] ss:$0 sm:$0xff] }
 0x7ba   :  { %v976_v55 = vrot.slane %v975_v1, 2 }
 0x7bc   :  { %v977_v11 = vadd.f32 %v976_v55, %v975_v1 }
 0x7be   :  { %v978_v59 = vrot.slane %v977_v11, 1 }
 0x7c0   :  { %v979_v60 = vadd.f32 %v978_v59, %v977_v11 }
 0x7c2   :  { %v980_v61 = vmul.f32 0.25, %v979_v60 }
 0x7c4   :  { %v981_v3 = vadd.f32 1e-05, %v980_v61 }
 0x7c6   :  { %3068 = vrsqrt.f32 %v981_v3 }
 0x7d0   :  { %v3069_v62 = vpop.eup %3068 }
 0x7d1   :  { %v983_v63 = vmul.f32 %v3069_v62, %v3392_v17 }
 0x7d3   :  { %v984_v57 = vmul.f32 %v983_v63, %v970_v47  ;;  %v990_v58 = vrot.slane %v983_v63, %v3394_v18 }
 0x7d5   :  { %v985_v12 = vsub.f32 %v3400_v23, %v984_v57  ;;  %v992_v2 = vmul.f32 %v990_v58, %v3671_v29 }
 0x7d7   :  { %v997_v6 = vrot.slane %v985_v12, %v3394_v18 }
 0x7d9   :  { %v999_v7 = vadd.f32 %v997_v6, %v992_v2 }
 0x7db   :  { %v1000_v8 = vmax.f32 %v999_v7, 0.0 }
 0x7dd   :  { %2410 = vmatmul.mubr.f32.vlgmr.msra.gmra.mrb[8].mxu0 %v1000_v8  ;;  %2445 = vmatmul.mubr.f32.vlgmr.msra.gmra.mrb[8].mxu1 %v1000_v8 }
 0x7de   :  { %2899 = vmatpush3.bf16.msra.mxu0 %v3309_v5  ;;  %2923 = vmatpush3.bf16.msra.mxu1 %v3312_v9 }
 0x7df   :  { %2900 = vmatprep.subr.bf16.mxu0 %v3189_v4  ;;  %2924 = vmatprep.subr.bf16.mxu1 %v3189_v4 }
 0x7e0   :  { %2479 = vmatprep.mubr.msk.f32.mxu0 %vm3190_vm0, %v3191_v13  ;;  %2514 = vmatprep.mubr.msk.f32.mxu1 %vm3190_vm0, %v3191_v13 }
 0x7e2   :  { %2902 = vmatpush3.bf16.msra.mxu0 %v3317_v14  ;;  %2926 = vmatpush3.bf16.msra.mxu1 %v3323_v15 }
 0x7e3   :  { %2903 = vmatprep.subr.bf16.mxu0 %v3189_v4  ;;  %2927 = vmatprep.subr.bf16.mxu1 %v3189_v4 }
 0x7e6   :  { %2905 = vmatpush3.bf16.msra.mxu0 %v3327_v20  ;;  %2929 = vmatpush3.bf16.msra.mxu1 %v3331_v21 }
 0x7e7   :  { %2906 = vmatprep.subr.bf16.mxu0 %v3189_v4  ;;  %2930 = vmatprep.subr.bf16.mxu1 %v3189_v4 }
 0x7ea   :  { %2908 = vmatpush3.bf16.msra.mxu0 %v3335_v26  ;;  %2932 = vmatpush3.bf16.msra.mxu1 %v3339_v27 }
 0x7eb   :  { %2909 = vmatprep.subr.bf16.mxu0 %v3189_v4  ;;  %2933 = vmatprep.subr.bf16.mxu1 %v3189_v4 }
 0x7ee   :  { %2911 = vmatpush3.bf16.msra.mxu0 %v3343_v32  ;;  %2935 = vmatpush3.bf16.msra.mxu1 %v3347_v33 }
 0x7ef   :  { %2912 = vmatprep.subr.bf16.mxu0 %v3189_v4  ;;  %2936 = vmatprep.subr.bf16.mxu1 %v3189_v4 }
 0x7f2   :  { %2914 = vmatpush3.bf16.msra.mxu0 %v3351_v38  ;;  %2938 = vmatpush3.bf16.msra.mxu1 %v3355_v39 }
 0x7f3   :  { %2915 = vmatprep.subr.bf16.mxu0 %v3189_v4  ;;  %2939 = vmatprep.subr.bf16.mxu1 %v3189_v4 }
 0x7f6   :  { %2917 = vmatpush3.bf16.msra.mxu0 %v3359_v44  ;;  %2941 = vmatpush3.bf16.msra.mxu1 %v3363_v45 }
 0x7f7   :  { %2918 = vmatprep.subr.bf16.mxu0 %v3189_v4  ;;  %2942 = vmatprep.subr.bf16.mxu1 %v3189_v4 }
 0x7fa   :  { %2920 = vmatpush3.bf16.msra.mxu0 %v3367_v50  ;;  %2944 = vmatpush3.bf16.msra.mxu1 %v3371_v51 }
 0x7fb   :  { %2945 = vmatprep.subr.bf16.mxu0 %v3189_v4  ;;  %2969 = vmatprep.subr.bf16.mxu1 %v3189_v4 }
 0x828   :  { %v1154_v47 = vpop.xlane.xlu1 %1153 }
 0x8b0   :  { %v1067_v22 = vpop.f32.mrb[8].mxu0  ;;  %v1137_v52 = vpop.f32.mrb[8].mxu1 }
 0x8b1   :  { %v1138_v24 = vadd.f32 %v3462_v42, %v1137_v52  ;;  %v2411_v25 = vpop.f32.mrb[9].mxu0  ;;  %v2446_v34 = vpop.f32.mrb[9].mxu1  ;;  %v1068_v56 = vadd.f32 %v3457_v41, %v1067_v22 }
 0x8b3   :  { %v1147_v30 = vmul.f32 %v1814_v16, %v1138_v24  ;;  %v1144_v31 = vmul.f32 %v1814_v16, %v1068_v56 }
 0x8b5   :  { %1148 = vadd.xlane.f32.xlu0 %v1147_v30 }
 0x8b9   :  { %1145 = vadd.xlane.f32.xlu0 %v1144_v31 }
 0x942   :  { %v1149_v37 = vpop.xlane.xlu0 %1148 }
 0x943   :  { %v1815_v40 = vclamps-f32 %v1149_v37, 10.0 }
 0x945   :  { %v1155_v43 = vmul.f32 1.442695, %v1815_v40  ;;  %v3726_v46 = vadd.f32 %v1815_v40, %v3663_v10 }
 0x946   :  { %v1146_v0 = vpop.xlane.xlu0 %1145 }
 0x947   :  { %3070 = vpow2.f32 %v1155_v43 }
 0x951   :  { %v3071_v48 = vpop.eup %3070 }
 0x952   :  { %v1157_v49 = vmul.f32 %v3071_v48, %v1154_v47 }
 0x954   :  { %v1158_v1 = vadd.f32 %v1157_v49, %v1146_v0 }
 0x956   :  { %v3731_v55 = vsel %vm1141_vm5, %v1158_v1, %v3668_v28  ;;  %v1166_v11 = vmul.f32 %v1816_v54, %v1158_v1 }
 0x958   :  { %v3734_v59 = vadd.f32 %v1166_v11, %v3671_v29 }
 0x95a   :  { %v1168_v10 = vmul.f32 %v3734_v59, %v3383_v53 }
 0x95c   :  { %v1169_v60 = vrot.slane %v1168_v10, 4 }
 0x95e   :  { %v1170_v61 = vadd.f32 %v1169_v60, %v1168_v10 }
 0x960   :  { %v1171_v3 = vrot.slane %v1170_v61, 2 }
 0x962   :  { %v1172_v62 = vadd.f32 %v1171_v3, %v1170_v61 }
 0x964   :  { %v1173_v63 = vrot.slane %v1172_v62, 1 }
 0x966   :  { %v1174_v57 = vadd.f32 %v1173_v63, %v1172_v62 }
 0x968   :  { %v1175_v58 = vmul.f32 0.25, %v1174_v57 }
 0x96a   :  { %v1176_v12 = vsub.f32 %v3734_v59, %v1175_v58 }
 0x96c   :  { %v1177_v2 = vmul.f32 %v1176_v12, %v1176_v12 }
 0x96e   :  { %v1178_v28 = vmul.f32 %v1177_v2, %v3383_v53 }
 0x970   :  { %v1179_v6 = vrot.slane %v1178_v28, 4 }
 0x972   :  { %v1180_v7 = vadd.f32 %v1179_v6, %v1178_v28 }
 0x974   :  { %v1181_v8 = vrot.slane %v1180_v7, 2 }
 0x976   :  { %v1182_v29 = vadd.f32 %v1181_v8, %v1180_v7 }
 0x978   :  { %v1183_v16 = vrot.slane %v1182_v29, 1 }
 0x97a   :  { %v1184_v19 = vadd.f32 %v1183_v16, %v1182_v29 }
 0x97c   :  { %v1185_v22 = vmul.f32 0.25, %v1184_v19 }
 0x97e   :  { %v1186_v52 = vadd.f32 1e-05, %v1185_v22 }
 0x980   :  { %3072 = vrsqrt.f32 %v1186_v52 }
 0x98a   :  { %v3073_v24 = vpop.eup %3072 }
 0x98b   :  { %v1188_v25 = vmul.f32 %v3073_v24, %v3392_v17  ;;  %v1817_v17 = vsel %vm1346_vm6, 1.0, %v3191_v13 }
 0x98d   :  { %v1189_v34 = vmul.f32 %v1188_v25, %v1175_v58  ;;  %v1195_v56 = vrot.slane %v1188_v25, %v3394_v18 }
 0x98f   :  { %v1190_v30 = vsub.f32 %v3400_v23, %v1189_v34  ;;  %v1197_v31 = vmul.f32 %v1195_v56, %v3734_v59  ;;  %v1357_v23 = vmul.f32 %v1817_v17, %v3448_v36 }
 0x991   :  { %v1202_v37 = vrot.slane %v1190_v30, %v3394_v18  ;;  %1358 = vadd.xlane.f32.xlu0 %v1357_v23 }
 0x993   :  { %v1204_v40 = vadd.f32 %v1202_v37, %v1197_v31 }
 0x995   :  { %v1205_v43 = vmax.f32 %v1204_v40, 0.0 }
 0x997   :  { %2480 = vmatmul.mubr.f32.vlgmr.msra.gmra.mrb[10].mxu0 %v1205_v43  ;;  %2515 = vmatmul.mubr.f32.vlgmr.msra.gmra.mrb[10].mxu1 %v1205_v43 }
 0x998   :  { %2947 = vmatpush3.bf16.msra.mxu0 %v3309_v5  ;;  %2971 = vmatpush3.bf16.msra.mxu1 %v3312_v9 }
 0x999   :  { %2948 = vmatprep.subr.bf16.mxu0 %v3189_v4  ;;  %2972 = vmatprep.subr.bf16.mxu1 %v3189_v4 }
 0x99a   :  { %2549 = vmatprep.mubr.msk.f32.mxu0 %vm3190_vm0, %v3191_v13  ;;  %2584 = vmatprep.mubr.msk.f32.mxu1 %vm3190_vm0, %v3191_v13 }
 0x99c   :  { %2950 = vmatpush3.bf16.msra.mxu0 %v3317_v14  ;;  %2974 = vmatpush3.bf16.msra.mxu1 %v3323_v15 }
 0x99d   :  { %2951 = vmatprep.subr.bf16.mxu0 %v3189_v4  ;;  %2975 = vmatprep.subr.bf16.mxu1 %v3189_v4 }
 0x9a0   :  { %2953 = vmatpush3.bf16.msra.mxu0 %v3327_v20  ;;  %2977 = vmatpush3.bf16.msra.mxu1 %v3331_v21 }
 0x9a1   :  { %2954 = vmatprep.subr.bf16.mxu0 %v3189_v4  ;;  %2978 = vmatprep.subr.bf16.mxu1 %v3189_v4 }
 0x9a4   :  { %2956 = vmatpush3.bf16.msra.mxu0 %v3335_v26  ;;  %2980 = vmatpush3.bf16.msra.mxu1 %v3339_v27 }
 0x9a5   :  { %2957 = vmatprep.subr.bf16.mxu0 %v3189_v4  ;;  %2981 = vmatprep.subr.bf16.mxu1 %v3189_v4 }
 0x9a8   :  { %2959 = vmatpush3.bf16.msra.mxu0 %v3343_v32  ;;  %2983 = vmatpush3.bf16.msra.mxu1 %v3347_v33 }
 0x9a9   :  { %2960 = vmatprep.subr.bf16.mxu0 %v3189_v4  ;;  %2984 = vmatprep.subr.bf16.mxu1 %v3189_v4 }
 0x9ac   :  { %2962 = vmatpush3.bf16.msra.mxu0 %v3351_v38  ;;  %2986 = vmatpush3.bf16.msra.mxu1 %v3355_v39 }
 0x9ad   :  { %2963 = vmatprep.subr.bf16.mxu0 %v3189_v4  ;;  %2987 = vmatprep.subr.bf16.mxu1 %v3189_v4 }
 0x9b0   :  { %2965 = vmatpush3.bf16.msra.mxu0 %v3359_v44  ;;  %2989 = vmatpush3.bf16.msra.mxu1 %v3363_v45 }
 0x9b1   :  { %2966 = vmatprep.subr.bf16.mxu0 %v3189_v4  ;;  %2990 = vmatprep.subr.bf16.mxu1 %v3189_v4 }
 0x9b4   :  { %2968 = vmatpush3.bf16.msra.mxu0 %v3367_v50  ;;  %2992 = vmatpush3.bf16.msra.mxu1 %v3371_v51 }
 0x9b5   :  { %2993 = vmatprep.subr.bf16.mxu0 %v3189_v4  ;;  %3017 = vmatprep.subr.bf16.mxu1 %v3189_v4 }
 0xa1e   :  { %v1359_v36 = vpop.xlane.xlu0 %1358 }
 0xa6a   :  { %v1272_v47 = vpop.f32.mrb[10].mxu0  ;;  %v1342_v48 = vpop.f32.mrb[10].mxu1 }
 0xa6b   :  { %v1343_v49 = vadd.f32 %v3462_v42, %v1342_v48  ;;  %v2481_v0 = vpop.f32.mrb[11].mxu0  ;;  %v2516_v54 = vpop.f32.mrb[11].mxu1  ;;  %v1273_v1 = vadd.f32 %v3457_v41, %v1272_v47  ;;  %v1819_v42 = vld [vmem:[#allocation2 + $0x5] ss:$0 sm:$0xff] }
 0xa6d   :  { %v1352_v11 = vmul.f32 %v1817_v17, %v1343_v49  ;;  %v1349_v10 = vmul.f32 %v1817_v17, %v1273_v1  ;;  %v3806_v17 = vld [vmem:[%s3903_s3] sm:$0x1] }
 0xa6e   :  { %v3813_v49 = vld [vmem:[%s3904_s4] sm:$0x1] }
 0xa6f   :  { %1353 = vadd.xlane.f32.xlu1 %v1352_v11 }
 0xa73   :  { %1350 = vadd.xlane.f32.xlu1 %v1349_v10 }
 0xafc   :  { %v1354_v60 = vpop.xlane.xlu1 %1353 }
 0xafd   :  { %v1818_v61 = vclamps-f32 %v1354_v60, 10.0 }
 0xaff   :  { %v1360_v3 = vmul.f32 1.442695, %v1818_v61  ;;  %v3789_v62 = vadd.f32 %v1818_v61, %v3726_v46 }
 0xb00   :  { %v1351_v58 = vpop.xlane.xlu1 %1350 }
 0xb01   :  { %3074 = vpow2.f32 %v1360_v3 }
 0xb0b   :  { %v3075_v63 = vpop.eup %3074 }
 0xb0c   :  { %v1362_v57 = vmul.f32 %v3075_v63, %v1359_v36  ;;  %v1822_v63 = vld [vmem:[#allocation2 + $0x6] ss:$0 sm:$0xff] }
 0xb0e   :  { %v1363_v12 = vadd.f32 %v1362_v57, %v1351_v58 }
 0xb10   :  { %v3794_v41 = vsel %vm1346_vm6, %v1363_v12, %v3731_v55  ;;  %v1371_v2 = vmul.f32 %v1819_v42, %v1363_v12 }
 0xb12   :  { %v3797_v28 = vadd.f32 %v1371_v2, %v3734_v59 }
 0xb14   :  { %v1373_v46 = vmul.f32 %v3797_v28, %v3383_v53 }
 0xb16   :  { %v1374_v6 = vrot.slane %v1373_v46, 4 }
 0xb18   :  { %v1375_v7 = vadd.f32 %v1374_v6, %v1373_v46 }
 0xb1a   :  { %v1376_v8 = vrot.slane %v1375_v7, 2 }
 0xb1c   :  { %v1377_v29 = vadd.f32 %v1376_v8, %v1375_v7 }
 0xb1e   :  { %v1378_v16 = vrot.slane %v1377_v29, 1 }
 0xb20   :  { %v1379_v19 = vadd.f32 %v1378_v16, %v1377_v29 }
 0xb22   :  { %v1380_v22 = vmul.f32 0.25, %v1379_v19 }
 0xb24   :  { %v1381_v52 = vsub.f32 %v3797_v28, %v1380_v22 }
 0xb26   :  { %v1382_v24 = vmul.f32 %v1381_v52, %v1381_v52 }
 0xb28   :  { %v1383_v55 = vmul.f32 %v1382_v24, %v3383_v53 }
 0xb2a   :  { %v1384_v25 = vrot.slane %v1383_v55, 4 }
 0xb2c   :  { %v1385_v34 = vadd.f32 %v1384_v25, %v1383_v55 }
 0xb2e   :  { %v1386_v56 = vrot.slane %v1385_v34, 2 }
 0xb30   :  { %v1387_v59 = vadd.f32 %v1386_v56, %v1385_v34 }
 0xb32   :  { %v1388_v30 = vrot.slane %v1387_v59, 1 }
 0xb34   :  { %v1389_v31 = vadd.f32 %v1388_v30, %v1387_v59 }
 0xb36   :  { %v1390_v37 = vmul.f32 0.25, %v1389_v31 }
 0xb38   :  { %v1391_v40 = vadd.f32 1e-05, %v1390_v37 }
 0xb3a   :  { %3076 = vrsqrt.f32 %v1391_v40 }
 0xb44   :  { %v3077_v43 = vpop.eup %3076 }
 0xb45   :  { %v1393_v23 = vmul.f32 %v3806_v17, %v3077_v43 }
 0xb47   :  { %v1394_v47 = vmul.f32 %v1393_v23, %v1380_v22  ;;  %v1400_v48 = vrot.slane %v1393_v23, %v3394_v18 }
 0xb49   :  { %v1395_v0 = vsub.f32 %v3813_v49, %v1394_v47  ;;  %v1402_v54 = vmul.f32 %v1400_v48, %v3797_v28 }
 0xb4b   :  { %v1407_v1 = vrot.slane %v1395_v0, %v3394_v18  ;;  %v1823_v0 = vsel %vm1756_vm8, 1.0, %v3191_v13 }
 0xb4d   :  { %v1409_v11 = vadd.f32 %v1407_v1, %v1402_v54 }
 0xb4f   :  { %v1410_v10 = vmax.f32 %v1409_v11, 0.0 }
 0xb51   :  { %2550 = vmatmul.mubr.f32.vlgmr.msra.gmra.mrb[12].mxu0 %v1410_v10  ;;  %2585 = vmatmul.mubr.f32.vlgmr.msra.gmra.mrb[12].mxu1 %v1410_v10 }
 0xb52   :  { %2995 = vmatpush3.bf16.msra.mxu0 %v3309_v5  ;;  %3019 = vmatpush3.bf16.msra.mxu1 %v3312_v9  ;;  %v1820_v5 = vsel %vm1551_vm7, 1.0, %v3191_v13  ;;  %v3086_v9 = vld [vmem:[%s3900_s0] sm:$0xff] }
 0xb53   :  { %2996 = vmatprep.subr.bf16.mxu0 %v3189_v4  ;;  %3020 = vmatprep.subr.bf16.mxu1 %v3189_v4  ;;  %v1767_v54 = vmul.f32 %v3086_v9, %v1823_v0 }
 0xb54   :  { %2619 = vmatprep.mubr.msk.f32.mxu0 %vm3190_vm0, %v3191_v13  ;;  %2654 = vmatprep.mubr.msk.f32.mxu1 %vm3190_vm0, %v3191_v13 }
 0xb56   :  { %2998 = vmatpush3.bf16.msra.mxu0 %v3317_v14  ;;  %3022 = vmatpush3.bf16.msra.mxu1 %v3323_v15  ;;  %v1562_v14 = vmul.f32 %v3086_v9, %v1820_v5 }
 0xb57   :  { %2999 = vmatprep.subr.bf16.mxu0 %v3189_v4  ;;  %3023 = vmatprep.subr.bf16.mxu1 %v3189_v4 }
 0xb58   :  { %1563 = vadd.xlane.f32.xlu1 %v1562_v14 }
 0xb5a   :  { %3001 = vmatpush3.bf16.msra.mxu0 %v3327_v20  ;;  %3025 = vmatpush3.bf16.msra.mxu1 %v3331_v21 }
 0xb5b   :  { %3002 = vmatprep.subr.bf16.mxu0 %v3189_v4  ;;  %3026 = vmatprep.subr.bf16.mxu1 %v3189_v4 }
 0xb5e   :  { %3004 = vmatpush3.bf16.msra.mxu0 %v3335_v26  ;;  %3028 = vmatpush3.bf16.msra.mxu1 %v3339_v27 }
 0xb5f   :  { %3005 = vmatprep.subr.bf16.mxu0 %v3189_v4  ;;  %3029 = vmatprep.subr.bf16.mxu1 %v3189_v4 }
 0xb62   :  { %3007 = vmatpush3.bf16.msra.mxu0 %v3343_v32  ;;  %3031 = vmatpush3.bf16.msra.mxu1 %v3347_v33  ;;  %v3088_v32 = vld [vmem:[%s3907_s7] ss:$0 sm:$0xff] }
 0xb63   :  { %3008 = vmatprep.subr.bf16.mxu0 %v3189_v4  ;;  %3032 = vmatprep.subr.bf16.mxu1 %v3189_v4 }
 0xb66   :  { %3010 = vmatpush3.bf16.msra.mxu0 %v3351_v38  ;;  %3034 = vmatpush3.bf16.msra.mxu1 %v3355_v39 }
 0xb67   :  { %3011 = vmatprep.subr.bf16.mxu0 %v3189_v4  ;;  %3035 = vmatprep.subr.bf16.mxu1 %v3189_v4 }
 0xb6a   :  { %3013 = vmatpush3.bf16.msra.mxu0 %v3359_v44  ;;  %3037 = vmatpush3.bf16.msra.mxu1 %v3363_v45 }
 0xb6b   :  { %3014 = vmatprep.subr.bf16.mxu0 %v3189_v4  ;;  %3038 = vmatprep.subr.bf16.mxu1 %v3189_v4  ;;  %v3087_v4 = vld [vmem:[%s3908_s8] ss:$0 sm:$0xff]  ;;  %s3192_s8 = smov [#allocation8]  }
 0xb6c   :  { %s1785_s1 = sshll.u32 %s3192_s8, 4  ;;  %s1786_s1 = int_to_ptr.vmem [resolvable:$true] %s1785_s1 }
 0xb6d   :  { %s3155_s20 = scalar_lea.vmem %s1786_s1, 128  ;;  %p3160_p11 = scmp.lt.s32.totalorder %s1786_s1, %s1786_s1 }
 0xb6e   :  { %3016 = vmatpush3.bf16.msra.mxu0 %v3367_v50  ;;  %3040 = vmatpush3.bf16.msra.mxu1 %v3371_v51  ;;  %p3156_p10 = scmp.ne.s32.totalorder %s1786_s1, %s3155_s20  ;;  %p3161_p12 = scmp.lt.s32.totalorder %s3155_s20, %s3155_s20 }
 0xb70   :  { %p3162_p13 = por %p3161_p12, %p3160_p11 }
 0xb72   :  { %p3163_p0 = pnand %p3162_p13, %p3156_p10 }
 0xbe5   :  { %v1564_v60 = vpop.xlane.xlu1 %1563 }
 0xc24   :  { %v1477_v15 = vpop.f32.mrb[12].mxu0  ;;  %v1547_v20 = vpop.f32.mrb[12].mxu1 }
 0xc25   :  { %v1548_v21 = vadd.f32 %v3087_v4, %v1547_v20  ;;  %v2551_v26 = vpop.f32.mrb[13].mxu0  ;;  %v2586_v27 = vpop.f32.mrb[13].mxu1  ;;  %v1478_v33 = vadd.f32 %v3088_v32, %v1477_v15 }
 0xc27   :  { %v1557_v38 = vmul.f32 %v1820_v5, %v1548_v21  ;;  %v1554_v39 = vmul.f32 %v1820_v5, %v1478_v33 }
 0xc29   :  { %1558 = vadd.xlane.f32.xlu0 %v1557_v38 }
 0xc2d   :  { %1555 = vadd.xlane.f32.xlu0 %v1554_v39 }
 0xc31   :  { %1768 = vadd.xlane.f32.xlu0 %v1767_v54 }
 0xcb6   :  { %v1559_v44 = vpop.xlane.xlu0 %1558 }
 0xcb7   :  { %v1821_v45 = vclamps-f32 %v1559_v44, 10.0 }
 0xcb9   :  { %v1565_v50 = vmul.f32 1.442695, %v1821_v45  ;;  %v1570_v51 = vadd.f32 %v1821_v45, %v3789_v62 }
 0xcba   :  { %v1556_v36 = vpop.xlane.xlu0 %1555 }
 0xcbb   :  { %3078 = vpow2.f32 %v1565_v50 }
 0xcbe   :  { %v1769_v13 = vpop.xlane.xlu0 %1768 }
 0xcc5   :  { %v3079_v61 = vpop.eup %3078 }
 0xcc6   :  { %v1567_v3 = vmul.f32 %v3079_v61, %v1564_v60 }
 0xcc8   :  { %v1568_v57 = vadd.f32 %v1567_v3, %v1556_v36 }
 0xcca   :  { %v1576_v58 = vmul.f32 %v1822_v63, %v1568_v57  ;;  %v3869_v42 = vsel %vm1551_vm7, %v1568_v57, %v3794_v41 }
 0xccc   :  { %v1577_v12 = vadd.f32 %v1576_v58, %v3797_v28 }
 0xcce   :  { %v1578_v2 = vmul.f32 %v1577_v12, %v3383_v53 }
 0xcd0   :  { %v1579_v46 = vrot.slane %v1578_v2, 4 }
 0xcd2   :  { %v1580_v6 = vadd.f32 %v1579_v46, %v1578_v2 }
 0xcd4   :  { %v1581_v62 = vrot.slane %v1580_v6, 2 }
 0xcd6   :  { %v1582_v7 = vadd.f32 %v1581_v62, %v1580_v6 }
 0xcd8   :  { %v1583_v8 = vrot.slane %v1582_v7, 1 }
 0xcda   :  { %v1584_v29 = vadd.f32 %v1583_v8, %v1582_v7 }
 0xcdc   :  { %v1585_v16 = vmul.f32 0.25, %v1584_v29 }
 0xcde   :  { %v1586_v19 = vsub.f32 %v1577_v12, %v1585_v16 }
 0xce0   :  { %v1587_v22 = vmul.f32 %v1586_v19, %v1586_v19 }
 0xce2   :  { %v1588_v52 = vmul.f32 %v1587_v22, %v3383_v53 }
 0xce4   :  { %v1589_v24 = vrot.slane %v1588_v52, 4 }
 0xce6   :  { %v1590_v55 = vadd.f32 %v1589_v24, %v1588_v52 }
 0xce8   :  { %v1591_v25 = vrot.slane %v1590_v55, 2 }
 0xcea   :  { %v1592_v41 = vadd.f32 %v1591_v25, %v1590_v55 }
 0xcec   :  { %v1593_v34 = vrot.slane %v1592_v41, 1 }
 0xcee   :  { %v1594_v56 = vadd.f32 %v1593_v34, %v1592_v41 }
 0xcf0   :  { %v1595_v28 = vmul.f32 0.25, %v1594_v56 }
 0xcf2   :  { %v1596_v59 = vadd.f32 1e-05, %v1595_v28 }
 0xcf4   :  { %3080 = vrsqrt.f32 %v1596_v59 }
 0xcfe   :  { %v3081_v30 = vpop.eup %3080 }
 0xcff   :  { %v1598_v31 = vmul.f32 %v3806_v17, %v3081_v30 }
 0xd01   :  { %v1599_v37 = vmul.f32 %v1598_v31, %v1585_v16  ;;  %v1605_v40 = vrot.slane %v1598_v31, %v3394_v18 }
 0xd03   :  { %v1600_v43 = vsub.f32 %v3813_v49, %v1599_v37  ;;  %v1607_v23 = vmul.f32 %v1605_v40, %v1577_v12 }
 0xd05   :  { %v1612_v53 = vrot.slane %v1600_v43, %v3394_v18 }
 0xd07   :  { %v1614_v47 = vadd.f32 %v1612_v53, %v1607_v23 }
 0xd09   :  { %v1615_v48 = vmax.f32 %v1614_v47, 0.0 }
 0xd0b   :  { %2620 = vmatmul.mubr.f32.vlgmr.msra.gmra.mrb[14].mxu0 %v1615_v48  ;;  %2655 = vmatmul.mubr.f32.vlgmr.msra.gmra.mrb[14].mxu1 %v1615_v48 }
 0xdde   :  { %v1682_v17 = vpop.f32.mrb[14].mxu0  ;;  %v1752_v1 = vpop.f32.mrb[14].mxu1 }
 0xddf   :  { %v1753_v11 = vadd.f32 %v3087_v4, %v1752_v1  ;;  %v2621_v10 = vpop.f32.mrb[15].mxu0  ;;  %v2656_v49 = vpop.f32.mrb[15].mxu1  ;;  %v1683_v5 = vadd.f32 %v3088_v32, %v1682_v17 }
 0xde1   :  { %v1762_v14 = vmul.f32 %v1823_v0, %v1753_v11  ;;  %v1759_v18 = vmul.f32 %v1823_v0, %v1683_v5 }
 0xde3   :  { %1763 = vadd.xlane.f32.xlu1 %v1762_v14 }
 0xde7   :  { %1760 = vadd.xlane.f32.xlu1 %v1759_v18 }
 0xe70   :  { %v1764_v15 = vpop.xlane.xlu1 %1763 }
 0xe71   :  { %v1824_v20 = vclamps-f32 %v1764_v15, 10.0 }
 0xe73   :  { %v1770_v21 = vmul.f32 1.442695, %v1824_v20  ;;  %v1775_v26 = vadd.f32 %v1824_v20, %v1570_v51 }
 0xe74   :  { %v1761_v27 = vpop.xlane.xlu1 %1760 }
 0xe75   :  { %3082 = vpow2.f32 %v1770_v21  ;;  %1778 = vst.msk [vmem:[%s3911_s11] sm:$0xff] %vm1777_vm9, %v1775_v26 }
 0xe7f   :  { %v3083_v9 = vpop.eup %3082 }
 0xe80   :  { %v1772_v4 = vmul.f32 %v3083_v9, %v1769_v13 }
 0xe82   :  { %v1773_v32 = vadd.f32 %v1772_v4, %v1761_v27 }
 0xe84   :  { %v1774_v33 = vsel %vm1756_vm8, %v1773_v32, %v3869_v42 }
 0xe85   :  { %1776 = vst [vmem:[#allocation8] sm:$0xff] %v1774_v33 }
 0xe86   :  { %3166 = shalt.err (!%p3163_p0)
}
 0xe87   :  { %s3167_s19 = scalar_lea.hbm %s3910_s10, 128 }
 0xe88   :  { %p3168_p1 = scmp.ne.s32.totalorder %s3910_s10, %s3167_s19  ;;  %p3171_p2 = scmp.lt.u32.totalorder %s3167_s19, %s3910_s10 }
 0xe8a   :  { %p3173_p3 = pnand %p3171_p2, %p3168_p1 }
 0xe8c   :  { %3176 = shalt.err (!%p3173_p3)
}
 0xe8d   :  { %1788 = dma.vmem_to_hbm [thread:$0]  %s1786_s1, 128, %s3910_s10, [#allocation4]  }
 0xe8e   :  { %3181 = dma.done.wait [#allocation4], 128  }
 0xe8f   :  { %3182 = vsyncadd [#allocation4], 4294967168 }
 0xe90   :  { %1796 = vsyncpa [#allocation3], 1 }
 0xe91   :  { %1797 = vsyncpa [#allocation6], 1 }
 0xe92   :  { %1798 = vsyncpa [#allocation4], 1 }

</bundles_post_ra>
